<compile_context>
chip_gen: v7x
topology: tpu7x:2x2x1
jax: 0.10.0
libtpu: 0.0.40
codegen_flags: <defaults>
</compile_context>

<pallas_src>
import functools

import jax
import jax.numpy as jnp
from jax.experimental import pallas as pl
from jax.experimental.pallas import tpu as pltpu

_LANE = 128


def _round_up(x, m):
    return ((x + m - 1) // m) * m


def _cnnblock_kernel(x_ref, w_ref, shift_ref, o_ref,
                     *, K, S, TH, W_out, Cin_p, Cout_p):
    # x_ref:     (1, Hp, Wp, Cin_p)     padded image, channel-padded to 128 lanes
    # w_ref:     (K*K, Cin_p, Cout_p)   BN-scale-folded weights, one matrix per tap
    # shift_ref: (1, Cout_p)            folded BN shift = beta - mean * scale
    # o_ref:     (1, TH, W_out, Cout_p) one output H-tile (lane-dense last dim)
    row0 = pl.multiple_of(pl.program_id(1) * (TH * S), TH * S)

    acc = jnp.zeros((TH * W_out, Cout_p), jnp.float32)
    # Direct conv: K*K ref-level slices, each a (TH*W_out, 128) x (128, 128) MXU
    # matmul accumulated in f32.  No whole-slab value load; the reshape is a
    # free collapse when W_out % 8 == 0 (true here).
    for kh in range(K):
        for kw in range(K):
            if S == 1:
                patch = x_ref[0, pl.ds(row0 + kh, TH), pl.ds(kw, W_out), :]
            else:
                patch = x_ref[0, pl.ds(row0 + kh, TH, S), pl.ds(kw, W_out, S), :]
            acc = acc + jnp.dot(patch.reshape(TH * W_out, Cin_p),
                                w_ref[kh * K + kw],
                                preferred_element_type=jnp.float32)

    # Epilogue: folded-BN shift + SiLU (sigmoid goes to the EUP), all f32.
    y = acc + shift_ref[...]
    y = y * jax.nn.sigmoid(y)
    o_ref[...] = y.reshape(1, TH, W_out, Cout_p).astype(o_ref.dtype)


def cnn_block_forward(x_nchw, w_oihw, gamma, beta, running_mean, running_var,
                      *, stride, padding, eps=1e-5):
    """CNNBlock forward (img=True, bn_act=True). x_nchw: (N, Cin, H, W)."""
    N, Cin, H, W = x_nchw.shape
    Cout, _, K, _ = w_oihw.shape
    S, P = stride, padding
    H_out = (H + 2 * P - K) // S + 1
    W_out = (W + 2 * P - K) // S + 1
    Hp, Wp = H + 2 * P, W + 2 * P

    Cin_p = _round_up(Cin, _LANE)
    Cout_p = _round_up(Cout, _LANE)

    # H-tiling: bounds the output block / vreg working set and gives the
    # pipeline (and v7x's second TensorCore) more than N steps of work.
    TH = H_out
    for cand in (64, 32, 16, 8):
        if H_out > cand and H_out % cand == 0:
            TH = cand
            break
    n_ht = H_out // TH

    # ---- glue (plain JAX, once per call): layout, spatial pad, channel pad, BN fold ----
    # TODO(synk): in a full model keep activations NHWC + channel-padded end-to-end so
    # these transposes/pads are not a per-layer HBM round trip.
    x_nhwc = jnp.transpose(x_nchw, (0, 2, 3, 1)).astype(jnp.float32)       # NCHW -> NHWC
    x_pad = jnp.pad(x_nhwc, ((0, 0), (P, P), (P, P), (0, Cin_p - Cin)))

    scale = gamma / jnp.sqrt(running_var + eps)                             # (Cout,)
    shift = beta - running_mean * scale                                     # (Cout,)
    # Fold the BN scale into the conv weights -> only shift + SiLU in-kernel.
    w_f = w_oihw.astype(jnp.float32) * scale[:, None, None, None]
    # OIHW -> (K*K, Cin, Cout): w_taps[kh*K+kw, ci, co] = W[co, ci, kh, kw]; pad channels.
    w_taps = jnp.transpose(w_f, (2, 3, 1, 0)).reshape(K * K, Cin, Cout)
    w_taps = jnp.pad(w_taps, ((0, 0), (0, Cin_p - Cin), (0, Cout_p - Cout)))
    shift_p = jnp.pad(shift, (0, Cout_p - Cout)).reshape(1, Cout_p).astype(jnp.float32)

    kernel = functools.partial(_cnnblock_kernel, K=K, S=S, TH=TH,
                               W_out=W_out, Cin_p=Cin_p, Cout_p=Cout_p)

    flops = 2 * N * H_out * W_out * K * K * Cin * Cout
    transcendentals = N * H_out * W_out * Cout
    bytes_accessed = 4 * (int(x_pad.size) + int(w_taps.size)
                          + N * H_out * W_out * Cout_p)

    out_nhwc = pl.pallas_call(
        kernel,
        out_shape=jax.ShapeDtypeStruct((N, H_out, W_out, Cout_p), jnp.float32),
        grid=(N, n_ht),
        in_specs=[
            # Full padded image per batch element; index_map ignores the h-tile axis
            # so the block stays resident in VMEM across h-tiles (no re-DMA per tile).
            pl.BlockSpec((1, Hp, Wp, Cin_p), lambda b, h: (b, 0, 0, 0)),
            pl.BlockSpec((K * K, Cin_p, Cout_p), lambda b, h: (0, 0, 0)),
            pl.BlockSpec((1, Cout_p), lambda b, h: (0, 0)),
        ],
        out_specs=pl.BlockSpec((1, TH, W_out, Cout_p), lambda b, h: (b, h, 0, 0)),
        compiler_params=pltpu.CompilerParams(
            dimension_semantics=("parallel", "arbitrary"),
            vmem_limit_bytes=48 * 1024 * 1024,
        ),
        cost_estimate=pl.CostEstimate(flops=flops,
                                      transcendentals=transcendentals,
                                      bytes_accessed=bytes_accessed),
    )(x_pad, w_taps, shift_p)

    # Strip channel padding, back to PyTorch NCHW.
    return jnp.transpose(out_nhwc[..., :Cout], (0, 3, 1, 2)).astype(x_nchw.dtype)


def _reference(x_nchw, w_oihw, gamma, beta, running_mean, running_var,
               *, stride, padding, eps=1e-5):
    y = jax.lax.conv_general_dilated(
        x_nchw, w_oihw, window_strides=(stride, stride),
        padding=[(padding, padding), (padding, padding)],
        dimension_numbers=("NCHW", "OIHW", "NCHW"))
    scale = (gamma / jnp.sqrt(running_var + eps)).reshape(1, -1, 1, 1)
    shift = (beta - running_mean * gamma / jnp.sqrt(running_var + eps)).reshape(1, -1, 1, 1)
    y = y * scale + shift
    return y * jax.nn.sigmoid(y)


if __name__ == "__main__":
    # Small, deterministic configuration: CNNBlock(4, 8, kernel_size=3, stride=1, padding=1)
    N, Cin, H, W = 2, 4, 16, 16
    Cout, K, S, P = 8, 3, 1, 1

    key = jax.random.PRNGKey(0)
    kx, kw, kg, kb, km, kv = jax.random.split(key, 6)
    x = jax.random.normal(kx, (N, Cin, H, W), jnp.float32)
    w = jax.random.normal(kw, (Cout, Cin, K, K), jnp.float32) * 0.1
    gamma = 1.0 + 0.1 * jax.random.normal(kg, (Cout,), jnp.float32)
    beta = 0.1 * jax.random.normal(kb, (Cout,), jnp.float32)
    running_mean = 0.1 * jax.random.normal(km, (Cout,), jnp.float32)
    running_var = jnp.abs(jax.random.normal(kv, (Cout,), jnp.float32)) + 0.5

    out = cnn_block_forward(x, w, gamma, beta, running_mean, running_var,
                            stride=S, padding=P)
    out = jax.block_until_ready(out)

    ref = _reference(x, w, gamma, beta, running_mean, running_var,
                     stride=S, padding=P)
    assert out.shape == (N, Cout, H, W)
    assert jnp.allclose(out, ref, rtol=1e-4, atol=1e-4), "mismatch vs reference"

    # TODO(synk): the Conv1d/BatchNorm1d (img=False) branch and training-mode BN
    # statistics of CNNBlock are not exercised by this (img=True, bn_act=True) path.
    print("KERNEL_OK")
</pallas_src>

<mosaic_0001>
module attributes {stable_mosaic.version = 11 : i64} {
  func.func @_cnnblock_kernel(%arg0: i32, %arg1: i32, %arg2: memref<1x18x18x128xf32, #tpu.memory_space<vmem>>, %arg3: memref<9x128x128xf32, #tpu.memory_space<vmem>>, %arg4: memref<1x128xf32, #tpu.memory_space<vmem>>, %arg5: memref<1x8x16x128xf32, #tpu.memory_space<vmem>>) attributes {dimension_semantics = [#tpu.dimension_semantics<parallel>, #tpu.dimension_semantics<arbitrary>], iteration_bounds = array<i64: 2, 2>, scalar_prefetch = 0 : i64, scratch_operands = 0 : i64, tpu.core_type = #tpu.core_type<tc>, window_params = [{transform_indices = @transform_0, window_bounds = array<i64: 1, 18, 18, 128>}, {pipeline_mode = #tpu.pipeline_mode<synchronous>, transform_indices = @transform_1, window_bounds = array<i64: 9, 128, 128>}, {pipeline_mode = #tpu.pipeline_mode<synchronous>, transform_indices = @transform_2, window_bounds = array<i64: 1, 128>}, {transform_indices = @transform_3, window_bounds = array<i64: 1, 8, 16, 128>}]} {
    %c8_i32 = arith.constant 8 : i32
    %0 = arith.muli %arg1, %c8_i32 : i32
    %1 = tpu.assume_multiple %0, 8 : i32
    %cst = arith.constant 0.000000e+00 : f32
    %2 = vector.broadcast %cst : f32 to vector<128x128xf32>
    %c0_i32 = arith.constant 0 : i32
    %3 = arith.addi %1, %c0_i32 : i32
    %c0 = arith.constant 0 : index
    %4 = arith.index_cast %3 : i32 to index
    %c0_0 = arith.constant 0 : index
    %c0_1 = arith.constant 0 : index
    %5 = vector.load %arg2[%c0, %4, %c0_0, %c0_1] : memref<1x18x18x128xf32, #tpu.memory_space<vmem>>, vector<1x8x16x128xf32>
    %6 = vector.shape_cast %5 : vector<1x8x16x128xf32> to vector<8x16x128xf32>
    %7 = vector.shape_cast %6 : vector<8x16x128xf32> to vector<128x128xf32>
    %c0_2 = arith.constant 0 : index
    %c0_3 = arith.constant 0 : index
    %c0_4 = arith.constant 0 : index
    %8 = vector.load %arg3[%c0_2, %c0_3, %c0_4] : memref<9x128x128xf32, #tpu.memory_space<vmem>>, vector<1x128x128xf32>
    %9 = vector.shape_cast %8 : vector<1x128x128xf32> to vector<128x128xf32>
    %cst_5 = arith.constant dense<0.000000e+00> : vector<128x128xf32>
    %10 = tpu.matmul %7, %9, %cst_5 {dimension_numbers = #tpu.dot_dimension_numbers<[1], [0], [0], [1], [0, 0, 1, 1], [], []>} : vector<128x128xf32>, vector<128x128xf32>, vector<128x128xf32> -> vector<128x128xf32>
    %11 = arith.addf %2, %10 : vector<128x128xf32>
    %c0_i32_6 = arith.constant 0 : i32
    %12 = arith.addi %1, %c0_i32_6 : i32
    %c0_7 = arith.constant 0 : index
    %13 = arith.index_cast %12 : i32 to index
    %c1 = arith.constant 1 : index
    %c0_8 = arith.constant 0 : index
    %14 = vector.load %arg2[%c0_7, %13, %c1, %c0_8] : memref<1x18x18x128xf32, #tpu.memory_space<vmem>>, vector<1x8x16x128xf32>
    %15 = vector.shape_cast %14 : vector<1x8x16x128xf32> to vector<8x16x128xf32>
    %16 = vector.shape_cast %15 : vector<8x16x128xf32> to vector<128x128xf32>
    %c1_9 = arith.constant 1 : index
    %c0_10 = arith.constant 0 : index
    %c0_11 = arith.constant 0 : index
    %17 = vector.load %arg3[%c1_9, %c0_10, %c0_11] : memref<9x128x128xf32, #tpu.memory_space<vmem>>, vector<1x128x128xf32>
    %18 = vector.shape_cast %17 : vector<1x128x128xf32> to vector<128x128xf32>
    %cst_12 = arith.constant dense<0.000000e+00> : vector<128x128xf32>
    %19 = tpu.matmul %16, %18, %cst_12 {dimension_numbers = #tpu.dot_dimension_numbers<[1], [0], [0], [1], [0, 0, 1, 1], [], []>} : vector<128x128xf32>, vector<128x128xf32>, vector<128x128xf32> -> vector<128x128xf32>
    %20 = arith.addf %11, %19 : vector<128x128xf32>
    %c0_i32_13 = arith.constant 0 : i32
    %21 = arith.addi %1, %c0_i32_13 : i32
    %c0_14 = arith.constant 0 : index
    %22 = arith.index_cast %21 : i32 to index
    %c2 = arith.constant 2 : index
    %c0_15 = arith.constant 0 : index
    %23 = vector.load %arg2[%c0_14, %22, %c2, %c0_15] : memref<1x18x18x128xf32, #tpu.memory_space<vmem>>, vector<1x8x16x128xf32>
    %24 = vector.shape_cast %23 : vector<1x8x16x128xf32> to vector<8x16x128xf32>
    %25 = vector.shape_cast %24 : vector<8x16x128xf32> to vector<128x128xf32>
    %c2_16 = arith.constant 2 : index
    %c0_17 = arith.constant 0 : index
    %c0_18 = arith.constant 0 : index
    %26 = vector.load %arg3[%c2_16, %c0_17, %c0_18] : memref<9x128x128xf32, #tpu.memory_space<vmem>>, vector<1x128x128xf32>
    %27 = vector.shape_cast %26 : vector<1x128x128xf32> to vector<128x128xf32>
    %cst_19 = arith.constant dense<0.000000e+00> : vector<128x128xf32>
    %28 = tpu.matmul %25, %27, %cst_19 {dimension_numbers = #tpu.dot_dimension_numbers<[1], [0], [0], [1], [0, 0, 1, 1], [], []>} : vector<128x128xf32>, vector<128x128xf32>, vector<128x128xf32> -> vector<128x128xf32>
    %29 = arith.addf %20, %28 : vector<128x128xf32>
    %c1_i32 = arith.constant 1 : i32
    %30 = arith.addi %1, %c1_i32 : i32
    %c0_20 = arith.constant 0 : index
    %31 = arith.index_cast %30 : i32 to index
    %c0_21 = arith.constant 0 : index
    %c0_22 = arith.constant 0 : index
    %32 = vector.load %arg2[%c0_20, %31, %c0_21, %c0_22] : memref<1x18x18x128xf32, #tpu.memory_space<vmem>>, vector<1x8x16x128xf32>
    %33 = vector.shape_cast %32 : vector<1x8x16x128xf32> to vector<8x16x128xf32>
    %34 = vector.shape_cast %33 : vector<8x16x128xf32> to vector<128x128xf32>
    %c3 = arith.constant 3 : index
    %c0_23 = arith.constant 0 : index
    %c0_24 = arith.constant 0 : index
    %35 = vector.load %arg3[%c3, %c0_23, %c0_24] : memref<9x128x128xf32, #tpu.memory_space<vmem>>, vector<1x128x128xf32>
    %36 = vector.shape_cast %35 : vector<1x128x128xf32> to vector<128x128xf32>
    %cst_25 = arith.constant dense<0.000000e+00> : vector<128x128xf32>
    %37 = tpu.matmul %34, %36, %cst_25 {dimension_numbers = #tpu.dot_dimension_numbers<[1], [0], [0], [1], [0, 0, 1, 1], [], []>} : vector<128x128xf32>, vector<128x128xf32>, vector<128x128xf32> -> vector<128x128xf32>
    %38 = arith.addf %29, %37 : vector<128x128xf32>
    %c1_i32_26 = arith.constant 1 : i32
    %39 = arith.addi %1, %c1_i32_26 : i32
    %c0_27 = arith.constant 0 : index
    %40 = arith.index_cast %39 : i32 to index
    %c1_28 = arith.constant 1 : index
    %c0_29 = arith.constant 0 : index
    %41 = vector.load %arg2[%c0_27, %40, %c1_28, %c0_29] : memref<1x18x18x128xf32, #tpu.memory_space<vmem>>, vector<1x8x16x128xf32>
    %42 = vector.shape_cast %41 : vector<1x8x16x128xf32> to vector<8x16x128xf32>
    %43 = vector.shape_cast %42 : vector<8x16x128xf32> to vector<128x128xf32>
    %c4 = arith.constant 4 : index
    %c0_30 = arith.constant 0 : index
    %c0_31 = arith.constant 0 : index
    %44 = vector.load %arg3[%c4, %c0_30, %c0_31] : memref<9x128x128xf32, #tpu.memory_space<vmem>>, vector<1x128x128xf32>
    %45 = vector.shape_cast %44 : vector<1x128x128xf32> to vector<128x128xf32>
    %cst_32 = arith.constant dense<0.000000e+00> : vector<128x128xf32>
    %46 = tpu.matmul %43, %45, %cst_32 {dimension_numbers = #tpu.dot_dimension_numbers<[1], [0], [0], [1], [0, 0, 1, 1], [], []>} : vector<128x128xf32>, vector<128x128xf32>, vector<128x128xf32> -> vector<128x128xf32>
    %47 = arith.addf %38, %46 : vector<128x128xf32>
    %c1_i32_33 = arith.constant 1 : i32
    %48 = arith.addi %1, %c1_i32_33 : i32
    %c0_34 = arith.constant 0 : index
    %49 = arith.index_cast %48 : i32 to index
    %c2_35 = arith.constant 2 : index
    %c0_36 = arith.constant 0 : index
    %50 = vector.load %arg2[%c0_34, %49, %c2_35, %c0_36] : memref<1x18x18x128xf32, #tpu.memory_space<vmem>>, vector<1x8x16x128xf32>
    %51 = vector.shape_cast %50 : vector<1x8x16x128xf32> to vector<8x16x128xf32>
    %52 = vector.shape_cast %51 : vector<8x16x128xf32> to vector<128x128xf32>
    %c5 = arith.constant 5 : index
    %c0_37 = arith.constant 0 : index
    %c0_38 = arith.constant 0 : index
    %53 = vector.load %arg3[%c5, %c0_37, %c0_38] : memref<9x128x128xf32, #tpu.memory_space<vmem>>, vector<1x128x128xf32>
    %54 = vector.shape_cast %53 : vector<1x128x128xf32> to vector<128x128xf32>
    %cst_39 = arith.constant dense<0.000000e+00> : vector<128x128xf32>
    %55 = tpu.matmul %52, %54, %cst_39 {dimension_numbers = #tpu.dot_dimension_numbers<[1], [0], [0], [1], [0, 0, 1, 1], [], []>} : vector<128x128xf32>, vector<128x128xf32>, vector<128x128xf32> -> vector<128x128xf32>
    %56 = arith.addf %47, %55 : vector<128x128xf32>
    %c2_i32 = arith.constant 2 : i32
    %57 = arith.addi %1, %c2_i32 : i32
    %c0_40 = arith.constant 0 : index
    %58 = arith.index_cast %57 : i32 to index
    %c0_41 = arith.constant 0 : index
    %c0_42 = arith.constant 0 : index
    %59 = vector.load %arg2[%c0_40, %58, %c0_41, %c0_42] : memref<1x18x18x128xf32, #tpu.memory_space<vmem>>, vector<1x8x16x128xf32>
    %60 = vector.shape_cast %59 : vector<1x8x16x128xf32> to vector<8x16x128xf32>
    %61 = vector.shape_cast %60 : vector<8x16x128xf32> to vector<128x128xf32>
    %c6 = arith.constant 6 : index
    %c0_43 = arith.constant 0 : index
    %c0_44 = arith.constant 0 : index
    %62 = vector.load %arg3[%c6, %c0_43, %c0_44] : memref<9x128x128xf32, #tpu.memory_space<vmem>>, vector<1x128x128xf32>
    %63 = vector.shape_cast %62 : vector<1x128x128xf32> to vector<128x128xf32>
    %cst_45 = arith.constant dense<0.000000e+00> : vector<128x128xf32>
    %64 = tpu.matmul %61, %63, %cst_45 {dimension_numbers = #tpu.dot_dimension_numbers<[1], [0], [0], [1], [0, 0, 1, 1], [], []>} : vector<128x128xf32>, vector<128x128xf32>, vector<128x128xf32> -> vector<128x128xf32>
    %65 = arith.addf %56, %64 : vector<128x128xf32>
    %c2_i32_46 = arith.constant 2 : i32
    %66 = arith.addi %1, %c2_i32_46 : i32
    %c0_47 = arith.constant 0 : index
    %67 = arith.index_cast %66 : i32 to index
    %c1_48 = arith.constant 1 : index
    %c0_49 = arith.constant 0 : index
    %68 = vector.load %arg2[%c0_47, %67, %c1_48, %c0_49] : memref<1x18x18x128xf32, #tpu.memory_space<vmem>>, vector<1x8x16x128xf32>
    %69 = vector.shape_cast %68 : vector<1x8x16x128xf32> to vector<8x16x128xf32>
    %70 = vector.shape_cast %69 : vector<8x16x128xf32> to vector<128x128xf32>
    %c7 = arith.constant 7 : index
    %c0_50 = arith.constant 0 : index
    %c0_51 = arith.constant 0 : index
    %71 = vector.load %arg3[%c7, %c0_50, %c0_51] : memref<9x128x128xf32, #tpu.memory_space<vmem>>, vector<1x128x128xf32>
    %72 = vector.shape_cast %71 : vector<1x128x128xf32> to vector<128x128xf32>
    %cst_52 = arith.constant dense<0.000000e+00> : vector<128x128xf32>
    %73 = tpu.matmul %70, %72, %cst_52 {dimension_numbers = #tpu.dot_dimension_numbers<[1], [0], [0], [1], [0, 0, 1, 1], [], []>} : vector<128x128xf32>, vector<128x128xf32>, vector<128x128xf32> -> vector<128x128xf32>
    %74 = arith.addf %65, %73 : vector<128x128xf32>
    %c2_i32_53 = arith.constant 2 : i32
    %75 = arith.addi %1, %c2_i32_53 : i32
    %c0_54 = arith.constant 0 : index
    %76 = arith.index_cast %75 : i32 to index
    %c2_55 = arith.constant 2 : index
    %c0_56 = arith.constant 0 : index
    %77 = vector.load %arg2[%c0_54, %76, %c2_55, %c0_56] : memref<1x18x18x128xf32, #tpu.memory_space<vmem>>, vector<1x8x16x128xf32>
    %78 = vector.shape_cast %77 : vector<1x8x16x128xf32> to vector<8x16x128xf32>
    %79 = vector.shape_cast %78 : vector<8x16x128xf32> to vector<128x128xf32>
    %c8 = arith.constant 8 : index
    %c0_57 = arith.constant 0 : index
    %c0_58 = arith.constant 0 : index
    %80 = vector.load %arg3[%c8, %c0_57, %c0_58] : memref<9x128x128xf32, #tpu.memory_space<vmem>>, vector<1x128x128xf32>
    %81 = vector.shape_cast %80 : vector<1x128x128xf32> to vector<128x128xf32>
    %cst_59 = arith.constant dense<0.000000e+00> : vector<128x128xf32>
    %82 = tpu.matmul %79, %81, %cst_59 {dimension_numbers = #tpu.dot_dimension_numbers<[1], [0], [0], [1], [0, 0, 1, 1], [], []>} : vector<128x128xf32>, vector<128x128xf32>, vector<128x128xf32> -> vector<128x128xf32>
    %83 = arith.addf %74, %82 : vector<128x128xf32>
    %c0_60 = arith.constant 0 : index
    %c0_61 = arith.constant 0 : index
    %84 = vector.load %arg4[%c0_60, %c0_61] : memref<1x128xf32, #tpu.memory_space<vmem>>, vector<1x128xf32>
    %85 = vector.broadcast %84 : vector<1x128xf32> to vector<128x128xf32>
    %86 = arith.addf %83, %85 : vector<128x128xf32>
    %87 = arith.negf %86 : vector<128x128xf32>
    %88 = math.exp %87 : vector<128x128xf32>
    %cst_62 = arith.constant 1.000000e+00 : f32
    %89 = vector.broadcast %cst_62 : f32 to vector<128x128xf32>
    %90 = arith.addf %89, %88 : vector<128x128xf32>
    %91 = arith.divf %89, %90 : vector<128x128xf32>
    %92 = arith.mulf %86, %91 : vector<128x128xf32>
    %93 = vector.shape_cast %92 : vector<128x128xf32> to vector<1x8x16x128xf32>
    %c0_63 = arith.constant 0 : index
    %c0_64 = arith.constant 0 : index
    %c0_65 = arith.constant 0 : index
    %c0_66 = arith.constant 0 : index
    %94 = vector.load %arg5[%c0_63, %c0_64, %c0_65, %c0_66] : memref<1x8x16x128xf32, #tpu.memory_space<vmem>>, vector<1x8x16x128xf32>
    tpu.vector_store %arg5[%c0_63, %c0_64, %c0_65, %c0_66], %93 {strides = array<i32>} : memref<1x8x16x128xf32, #tpu.memory_space<vmem>>, vector<1x8x16x128xf32>,
    return
  }
  func.func @transform_0(%arg0: i32, %arg1: i32) -> (i32, i32, i32, i32) {
    %c0_i32 = arith.constant 0 : i32
    %c0_i32_0 = arith.constant 0 : i32
    %c0_i32_1 = arith.constant 0 : i32
    %c0_i32_2 = arith.constant 0 : i32
    return %arg0, %c0_i32, %c0_i32_0, %c0_i32_1 : i32, i32, i32, i32
  }
  func.func @transform_1(%arg0: i32, %arg1: i32) -> (i32, i32, i32) {
    %c0_i32 = arith.constant 0 : i32
    %c0_i32_0 = arith.constant 0 : i32
    %c0_i32_1 = arith.constant 0 : i32
    %c0_i32_2 = arith.constant 0 : i32
    return %c0_i32, %c0_i32_0, %c0_i32_1 : i32, i32, i32
  }
  func.func @transform_2(%arg0: i32, %arg1: i32) -> (i32, i32) {
    %c0_i32 = arith.constant 0 : i32
    %c0_i32_0 = arith.constant 0 : i32
    %c0_i32_1 = arith.constant 0 : i32
    return %c0_i32, %c0_i32_0 : i32, i32
  }
  func.func @transform_3(%arg0: i32, %arg1: i32) -> (i32, i32, i32, i32) {
    %c0_i32 = arith.constant 0 : i32
    %c0_i32_0 = arith.constant 0 : i32
    %c0_i32_1 = arith.constant 0 : i32
    return %arg0, %arg1, %c0_i32, %c0_i32_0 : i32, i32, i32, i32
  }
}

</mosaic_0001>

<bundles_post_ra>
// kernel: tpu_custom_call.1
= control target key start
LH: loop header
LB: loop body
LE: loop exit
PB: predicated region body
PF: predicated region fallthrough
CT: control target
= control target key end

     0   :  { %8 = vsyncpa [#allocation3], 0  ;;  %s4883_s0 = inlined_call_operand.vmem [shape: f32[2,18,18,128], index: 0, kind: input, shape index: {}]   ;;  %s4884_s1 = inlined_call_operand.vmem [shape: f32[9,128,128], index: 1, kind: input, shape index: {}]   ;;  %s4885_s2 = inlined_call_operand.vmem [shape: f32[1,128], index: 2, kind: input, shape index: {}]   ;;  %s4886_s3 = inlined_call_operand.hbm [shape: f32[2,16,16,128], index: 3, kind: output, shape index: {}]  }
   0x1   :  { %10 = vsyncpa [#allocation3 + $0x1], 0  ;;  %s3903_s12 = smov 0   ;;  %s3905_s13 = smov 0  }
   0x2   :  { %s3907_s14 = smov 0   ;;  %s3909_s15 = smov 0  }
   0x3   :  { %s3911_s16 = smov 0   ;;  %s3913_s17 = smov 0  }
   0x4   :  { %s3915_s18 = smov 0   ;;  %s3917_s19 = smov 0  }
   0x5 LB: > { %s2160_s20 = sadd.s32 4294967295, %s3878_s19   ;;  %s2161_s21 = sadd.s32 4294967294, %s3878_s19   ;;  %s3878_s19 = sphi %s3917_s19, %s16_s19   ;;  %s3874_s18 = sphi %s3915_s18, %s4895_s18   ;;  %s3870_s17 = sphi %s3913_s17, %s4894_s17   ;;  %s3866_s16 = sphi %s3911_s16, %s4893_s16   ;;  %s3862_s15 = sphi %s3909_s15, %s4892_s15   ;;  %s3858_s14 = sphi %s3907_s14, %s4891_s14   ;;  %s3854_s13 = sphi %s3905_s13, %s4890_s13   ;;  %s3850_s12 = sphi %s3903_s12, %s4889_s12  }
   0x6   : > { %s25_s22 = sadd.s32 1, %s3870_s17  ;;  %s28_s23 = sadd.s32 1, %s3874_s18 }
   0x7   : > { %p26_p0 = scmp.ge.s32.totalorder %s25_s22, 2  ;;  %p115_p1 = scmp.ne.s32.totalorder %s3858_s14, %s3854_s13 }
   0x8   : > { %p116_p2 = scmp.eq.s32.totalorder %s2160_s20, 3  ;;  %p121_p5 = scmp.ne.s32.totalorder %s3854_s13, %s3850_s12 }
   0x9   : > { %s4897_s22 = smov (%p26_p0, %s25_s22), 0  ;;  %s4899_s23 = smov (!%p26_p0, %s28_s23), %s3874_s18 }
   0xa   : > { %s101_s24 = ssub.s32 %s3870_s17, %s4897_s22  ;;  %p3954_p3 = por %p116_p2, %p115_p1 }
   0xb   : > { %p30_p4 = scmp.ge.s32.totalorder %s4899_s23, 2  ;;  %p122_p6 = scmp.eq.s32.totalorder %s2161_s21, 3 }
   0xc   : > { %p2164_p7 = scmp.ge.s32.totalorder %s3878_s19, 1  ;;  %p154_p9 = scmp.lt.s32.totalorder %s3878_s19, 5 }
   0xd   : > { %s4901_s23 = smov (%p30_p4, %s4899_s23), 0  ;;  %p3963_p8 = por %p122_p6, %p121_p5 }
   0xe   : > { %s100_s27 = ssub.s32 %s3874_s18, %s4901_s23  ;;  %s105_s28 = sadd.s32 1, %s3858_s14 }
   0xf   : > { %s102_s29 = sor.u32 %s101_s24, %s100_s27  ;;  %p155_p10 = pnand %p2164_p7, %p154_p9 }
  0x10   : > { %p103_p11 = scmp.eq.s32.totalorder %s102_s29, 0  ;;  %v2169_v0 = vld [vmem:[%s4884_s1 + $0x80] sm:$0xff] (!%p155_p10)  ;;  %v2170_v1 = vld [vmem:[%s4884_s1 + $0x88] sm:$0xff] (!%p155_p10)  ;;  %p178_p12 = scmp.lt.s32.totalorder (!%p155_p10), %s3866_s16, 1  ;;  %v2171_v5 = vld [vmem:[%s4884_s1 + $0x90] sm:$0xff] (!%p155_p10) }
  0x11   : > { %158 = sbr.rel (%p155_p10) target bundleno = 467 (0x1d3), region = 32  ;;  %v2251_v2 = vld [vmem:[%s4884_s1 + $0x200] sm:$0xff] (!%p155_p10)  ;;  %v3214_v3 = vpack.c.bf16 (!%p155_p10), %v2170_v1, %v2169_v0  ;;  %v2252_v4 = vld [vmem:[%s4884_s1 + $0x208] sm:$0xff] (!%p155_p10)  ;;  %v2172_v6 = vld [vmem:[%s4884_s1 + $0x98] sm:$0xff] (!%p155_p10)  ;;  %s175_s20 = sand.u32 (!%p155_p10), 1, %s3854_s13  }
  0x12   : > { %s3972_s30 = scalar_select %p103_p11, %s3858_s14, %s105_s28  }
  0x13   : > { %v3342_v7 = vpack.c.bf16 (!%p155_p10), %v2252_v4, %v2251_v2  ;;  %v3218_v8 = vpack.c.bf16 (!%p155_p10), %v2172_v6, %v2171_v5  ;;  %v2253_v9 = vld [vmem:[%s4884_s1 + $0x210] sm:$0xff] (!%p155_p10)  ;;  %v2254_v10 = vld [vmem:[%s4884_s1 + $0x218] sm:$0xff] (!%p155_p10)  ;;  %v2173_v11 = vld [vmem:[%s4884_s1 + $0xa0] sm:$0xff] (!%p155_p10)  ;;  %3215 = vmatprep.subr.bf16.mxu1 (!%p155_p10), %v3214_v3  ;;  %s2168_s27 = smul.u32 (!%p155_p10), 192, %s3862_s15  ;;  %s2421_s29 = sshll.u32 (!%p155_p10), %s3862_s15, 4 }
  0x14   : > { %v3346_v12 = vpack.c.bf16 (!%p155_p10), %v2254_v10, %v2253_v9  ;;  %v2174_v13 = vld [vmem:[%s4884_s1 + $0xa8] sm:$0xff] (!%p155_p10)  ;;  %v2255_v14 = vld [vmem:[%s4884_s1 + $0x220] sm:$0xff] (!%p155_p10)  ;;  %3217 = vmatpush3.bf16.msra.mxu1 (!%p155_p10), %v3214_v3  ;;  %v2175_v18 = vld [vmem:[%s4884_s1 + $0xb0] sm:$0xff] (!%p155_p10)  ;;  %s4831_s15 = scalar_lea.sflag (!%p155_p10), [#allocation3], %s175_s20 }
  0x15   : > { %v2256_v15 = vld [vmem:[%s4884_s1 + $0x228] sm:$0xff] (!%p155_p10)  ;;  %3343 = vmatprep.subr.bf16.mxu0 (!%p155_p10), %v3342_v7  ;;  %3219 = vmatprep.subr.bf16.mxu1 (!%p155_p10), %v3218_v8  ;;  %v3222_v16 = vpack.c.bf16 (!%p155_p10), %v2174_v13, %v2173_v11  ;;  %v2176_v19 = vld [vmem:[%s4884_s1 + $0xb8] sm:$0xff] (!%p155_p10)  ;;  %v2257_v20 = vld [vmem:[%s4884_s1 + $0x230] sm:$0xff] (!%p155_p10) }
  0x16   : > { %3345 = vmatpush3.bf16.msra.mxu0 (!%p155_p10), %v3342_v7  ;;  %v3350_v17 = vpack.c.bf16 (!%p155_p10), %v2256_v15, %v2255_v14  ;;  %v2258_v21 = vld [vmem:[%s4884_s1 + $0x238] sm:$0xff] (!%p155_p10)  ;;  %v3226_v22 = vpack.c.bf16 (!%p155_p10), %v2176_v19, %v2175_v18  ;;  %v2177_v24 = vld [vmem:[%s4884_s1 + $0xc0] sm:$0xff] (!%p155_p10)  ;;  %v2178_v25 = vld [vmem:[%s4884_s1 + $0xc8] sm:$0xff] (!%p155_p10) }
  0x17   : > { %3347 = vmatprep.subr.bf16.mxu0 (!%p155_p10), %v3346_v12  ;;  %v3354_v23 = vpack.c.bf16 (!%p155_p10), %v2258_v21, %v2257_v20  ;;  %v2259_v27 = vld [vmem:[%s4884_s1 + $0x240] sm:$0xff] (!%p155_p10)  ;;  %v2260_v28 = vld [vmem:[%s4884_s1 + $0x248] sm:$0xff] (!%p155_p10)  ;;  %v3230_v30 = vpack.c.bf16 (!%p155_p10), %v2178_v25, %v2177_v24  ;;  %v2179_v32 = vld [vmem:[%s4884_s1 + $0xd0] sm:$0xff] (!%p155_p10) }
  0x18   : > { %s179_s8 = scalar_select %p178_p12, %s3866_s16, 1  ;;  %3221 = vmatpush3.bf16.msra.mxu1 %v3218_v8  ;;  %v3358_v31 = vpack.c.bf16 %v2260_v28, %v2259_v27  ;;  %v2180_v33 = vld [vmem:[%s4884_s1 + $0xd8] sm:$0xff]  ;;  %v2261_v34 = vld [vmem:[%s4884_s1 + $0x250] sm:$0xff]  ;;  %v2181_v38 = vld [vmem:[%s4884_s1 + $0xe0] sm:$0xff] }
  0x19   : > { %3223 = vmatprep.subr.bf16.mxu1 %v3222_v16  ;;  %v2262_v35 = vld [vmem:[%s4884_s1 + $0x258] sm:$0xff]  ;;  %v3234_v36 = vpack.c.bf16 %v2180_v33, %v2179_v32  ;;  %v2182_v39 = vld [vmem:[%s4884_s1 + $0xe8] sm:$0xff]  ;;  %v2263_v40 = vld [vmem:[%s4884_s1 + $0x260] sm:$0xff] }
  0x1a   : > { %s3646_s28 = smul.u32 432, %s179_s8  ;;  %3349 = vmatpush3.bf16.msra.mxu0 %v3346_v12  ;;  %v3362_v37 = vpack.c.bf16 %v2262_v35, %v2261_v34  ;;  %v2264_v41 = vld [vmem:[%s4884_s1 + $0x268] sm:$0xff]  ;;  %v3238_v42 = vpack.c.bf16 %v2182_v39, %v2181_v38  ;;  %v2183_v44 = vld [vmem:[%s4884_s1 + $0xf0] sm:$0xff]  ;;  %v2184_v45 = vld [vmem:[%s4884_s1 + $0xf8] sm:$0xff]  ;;  %s2165_s8 = sshll.u32 %s175_s20, 7 }
  0x1b   : > { %3351 = vmatprep.subr.bf16.mxu0 %v3350_v17  ;;  %v3366_v43 = vpack.c.bf16 %v2264_v41, %v2263_v40  ;;  %v2265_v46 = vld [vmem:[%s4884_s1 + $0x270] sm:$0xff]  ;;  %v2266_v47 = vld [vmem:[%s4884_s1 + $0x278] sm:$0xff]  ;;  %v3242_v48 = vpack.c.bf16 %v2184_v45, %v2183_v44  ;;  %v203_v50 = vld [vmem:[%s4884_s1] sm:$0xff]  ;;  %s4787_s21 = scalar_lea.vmem [#allocation2], %s2165_s8 }
  0x1c   : > { %s182_s10 = scalar_lea.vmem %s4883_s0, %s3646_s28  ;;  %3225 = vmatpush3.bf16.msra.mxu1 %v3222_v16  ;;  %v3370_v49 = vpack.c.bf16 %v2266_v47, %v2265_v46  ;;  %v204_v51 = vld [vmem:[%s4884_s1 + $0x8] sm:$0xff]  ;;  %v2283_v52 = vld [vmem:[%s4884_s1 + $0x280] sm:$0xff]  ;;  %v205_v56 = vld [vmem:[%s4884_s1 + $0x10] sm:$0xff]  ;;  %s2417_s28 = sshll.u32 %s3866_s16, 5 }
  0x1d   : > { %s4028_s24 = scalar_lea.vmem %s182_s10, %s2168_s27  ;;  %3227 = vmatprep.subr.bf16.mxu1 %v3226_v22  ;;  %v2284_v53 = vld [vmem:[%s4884_s1 + $0x288] sm:$0xff]  ;;  %v3246_v54 = vpack.c.bf16 %v204_v51, %v203_v50  ;;  %v206_v57 = vld [vmem:[%s4884_s1 + $0x18] sm:$0xff]  ;;  %v2285_v59 = vld [vmem:[%s4884_s1 + $0x290] sm:$0xff]  ;;  %s2071_s4 = sadd.s32 %s2421_s29, %s2417_s28 }
  0x1e   : > { %v219_v26 = vld [vmem:[%s4028_s24 + $0x1] sm:$0xff]  ;;  %v4044_v29 = vld [vmem:[%s4028_s24 + $0x19] sm:$0xff]  ;;  %3353 = vmatpush3.bf16.msra.mxu0 %v3350_v17  ;;  %v3374_v55 = vpack.c.bf16 %v2284_v53, %v2283_v52  ;;  %v220_v58 = vld [vmem:[%s4028_s24 + $0x9] sm:$0xff]  ;;  %v3250_v62 = vpack.c.bf16 %v206_v57, %v205_v56  ;;  %s2418_s5 = sshll.u32 %s2071_s4, 7  ;;  %s2074_s6 = sshll.u32 %s4787_s21, 4  ;;  %s4824_s6 = int_to_ptr.vmem [resolvable:$true] %s2074_s6 }
  0x1f   : > { %2742 = vmatprep.mubr.f32.mxu1 %v219_v26  ;;  %2966 = vmatprep.mubr.f32.mxu0 %v4044_v29  ;;  %v2286_v60 = vld [vmem:[%s4884_s1 + $0x298] sm:$0xff]  ;;  %v2236_v61 = vld [vmem:[%s4028_s24 + $0x21] sm:$0xff]  ;;  %v4130_v7 = vld [vmem:[%s4028_s24 + $0x49] sm:$0xff]  ;;  %s4822_s9 = scalar_lea.hbm %s4886_s3, %s2418_s5  ;;  %s3784_s16 = scalar_lea.vmem %s4824_s6, 2048 }
  0x20   : > { %3355 = vmatprep.subr.bf16.mxu0 %v3354_v23  ;;  %3229 = vmatpush3.bf16.msra.mxu1 %v3226_v22  ;;  %v4110_v63 = vld [vmem:[%s4028_s24 + $0x31] sm:$0xff]  ;;  %v3378_v0 = vpack.c.bf16 %v2286_v60, %v2285_v59  ;;  %v207_v1 = vld [vmem:[%s4884_s1 + $0x20] sm:$0xff]  ;;  %v208_v2 = vld [vmem:[%s4884_s1 + $0x28] sm:$0xff]  ;;  %p3785_p13 = scmp.ne.s32.totalorder %s4824_s6, %s3784_s16  ;;  %s3880_s10 = smov [#allocation2]  }
  0x21   : > { %3231 = vmatprep.subr.bf16.mxu1 %v3230_v30  ;;  %v2287_v3 = vld [vmem:[%s4884_s1 + $0x2a0] sm:$0xff]  ;;  %v2288_v4 = vld [vmem:[%s4884_s1 + $0x2a8] sm:$0xff]  ;;  %v3254_v6 = vpack.c.bf16 %v208_v2, %v207_v1  ;;  %v209_v9 = vld [vmem:[%s4884_s1 + $0x30] sm:$0xff] }
  0x22   : > { %3357 = vmatpush3.bf16.msra.mxu0 %v3354_v23  ;;  %v4126_v5 = vld [vmem:[%s4028_s24 + $0x39] sm:$0xff]  ;;  %v3382_v8 = vpack.c.bf16 %v2288_v4, %v2287_v3  ;;  %v2289_v11 = vld [vmem:[%s4884_s1 + $0x2b0] sm:$0xff]  ;;  %v4152_v15 = vld [vmem:[%s4028_s24 + $0x61] sm:$0xff]  ;;  %p3786_p0 = pnand %p3785_p13, %p3954_p3 }
  0x23   : > { %3359 = vmatprep.subr.bf16.mxu0 %v3358_v31  ;;  %v210_v10 = vld [vmem:[%s4884_s1 + $0x38] sm:$0xff]  ;;  %v211_v17 = vld [vmem:[%s4884_s1 + $0x40] sm:$0xff]  ;;  %v212_v18 = vld [vmem:[%s4884_s1 + $0x48] sm:$0xff] }
  0x24   : > { %3233 = vmatpush3.bf16.msra.mxu1 %v3230_v30  ;;  %v2290_v12 = vld [vmem:[%s4884_s1 + $0x2b8] sm:$0xff]  ;;  %v3258_v14 = vpack.c.bf16 %v210_v10, %v209_v9  ;;  %v2291_v19 = vld [vmem:[%s4884_s1 + $0x2c0] sm:$0xff]  ;;  %v2292_v20 = vld [vmem:[%s4884_s1 + $0x2c8] sm:$0xff]  ;;  %v3262_v22 = vpack.c.bf16 %v212_v18, %v211_v17  ;;  %p3787_p1 = pneg %p3786_p0 }
  0x25   : > { %3235 = vmatprep.subr.bf16.mxu1 %v3234_v36  ;;  %v4147_v13 = vld [vmem:[%s4028_s24 + $0x51] sm:$0xff]  ;;  %v3386_v16 = vpack.c.bf16 %v2290_v12, %v2289_v11  ;;  %v4169_v21 = vld [vmem:[%s4028_s24 + $0x69] sm:$0xff]  ;;  %v4174_v23 = vld [vmem:[%s4028_s24 + $0x79] sm:$0xff]  ;;  %v3390_v24 = vpack.c.bf16 %v2292_v20, %v2291_v19 }
  0x26   : > { %3361 = vmatpush3.bf16.msra.mxu0 %v3358_v31  ;;  %v213_v25 = vld [vmem:[%s4884_s1 + $0x50] sm:$0xff]  ;;  %v214_v26 = vld [vmem:[%s4884_s1 + $0x58] sm:$0xff]  ;;  %v215_v33 = vld [vmem:[%s4884_s1 + $0x60] sm:$0xff] }
  0x27   : > { %3363 = vmatprep.subr.bf16.mxu0 %v3362_v37  ;;  %v2293_v27 = vld [vmem:[%s4884_s1 + $0x2d0] sm:$0xff]  ;;  %v2294_v28 = vld [vmem:[%s4884_s1 + $0x2d8] sm:$0xff]  ;;  %v3266_v30 = vpack.c.bf16 %v214_v26, %v213_v25  ;;  %v216_v34 = vld [vmem:[%s4884_s1 + $0x68] sm:$0xff] }
  0x28   : > { %3237 = vmatpush3.bf16.msra.mxu1 %v3234_v36  ;;  %v4196_v31 = vld [vmem:[%s4028_s24 + $0x91] sm:$0xff]  ;;  %v3394_v32 = vpack.c.bf16 %v2294_v28, %v2293_v27  ;;  %v2295_v35 = vld [vmem:[%s4884_s1 + $0x2e0] sm:$0xff]  ;;  %v2296_v36 = vld [vmem:[%s4884_s1 + $0x2e8] sm:$0xff]  ;;  %v3270_v38 = vpack.c.bf16 %v216_v34, %v215_v33 }
  0x29   : > { %3239 = vmatprep.subr.bf16.mxu1 %v3238_v42  ;;  %v4218_v39 = vld [vmem:[%s4028_s24 + $0xa9] sm:$0xff]  ;;  %v3398_v40 = vpack.c.bf16 %v2296_v36, %v2295_v35  ;;  %v2298_v44 = vld [vmem:[%s4884_s1 + $0x2f8] sm:$0xff]  ;;  %v4240_v47 = vld [vmem:[%s4028_s24 + $0xc1] sm:$0xff] }
  0x2a   : > { %3365 = vmatpush3.bf16.msra.mxu0 %v3362_v37  ;;  %v4213_v37 = vld [vmem:[%s4028_s24 + $0x99] sm:$0xff]  ;;  %v217_v41 = vld [vmem:[%s4884_s1 + $0x70] sm:$0xff]  ;;  %v2186_v50 = vld [vmem:[%s4884_s1 + $0x108] sm:$0xff] }
  0x2b   : > { %3367 = vmatprep.subr.bf16.mxu0 %v3366_v43  ;;  %v4235_v45 = vld [vmem:[%s4028_s24 + $0xb1] sm:$0xff]  ;;  %v2317_v51 = vld [vmem:[%s4884_s1 + $0x300] sm:$0xff]  ;;  %v2318_v52 = vld [vmem:[%s4884_s1 + $0x308] sm:$0xff] }
  0x2c   : > { %3241 = vmatpush3.bf16.msra.mxu1 %v3238_v42  ;;  %v218_v42 = vld [vmem:[%s4884_s1 + $0x78] sm:$0xff]  ;;  %v4257_v53 = vld [vmem:[%s4028_s24 + $0xc9] sm:$0xff]  ;;  %v3406_v57 = vpack.c.bf16 %v2318_v52, %v2317_v51  ;;  %v4297_v9 = vld [vmem:[%s4028_s24 + $0x20] sm:$0xff] }
  0x2d   : > { %3243 = vmatprep.subr.bf16.mxu1 %v3242_v48  ;;  %v3274_v46 = vpack.c.bf16 %v218_v42, %v217_v41  ;;  %v4263_v56 = vld [vmem:[%s4028_s24 + $0x1a] sm:$0xff]  ;;  %v188_v60 = vld [vmem:[%s4028_s24 + $0x8] sm:$0xff]  ;;  %v4287_v3 = vld [vmem:[%s4028_s24 + $0x32] sm:$0xff] }
  0x2e   : > { %3369 = vmatpush3.bf16.msra.mxu0 %v3366_v43  ;;  %v2297_v43 = vld [vmem:[%s4884_s1 + $0x2f0] sm:$0xff]  ;;  %v2188_v59 = vld [vmem:[%s4884_s1 + $0x118] sm:$0xff]  ;;  %v2321_v10 = vld [vmem:[%s4884_s1 + $0x320] sm:$0xff] }
  0x2f   : > { %3371 = vmatprep.subr.bf16.mxu0 %v3370_v49  ;;  %v4284_v1 = vld [vmem:[%s4028_s24 + $0x18] sm:$0xff]  ;;  %v2322_v11 = vld [vmem:[%s4884_s1 + $0x328] sm:$0xff]  ;;  %v2191_v19 = vld [vmem:[%s4884_s1 + $0x130] sm:$0xff] }
  0x30   : > { %3245 = vmatpush3.bf16.msra.mxu1 %v3242_v48  ;;  %v3402_v48 = vpack.c.bf16 %v2298_v44, %v2297_v43  ;;  %v4307_v12 = vld [vmem:[%s4028_s24 + $0x3a] sm:$0xff]  ;;  %v4315_v17 = vld [vmem:[%s4028_s24 + $0x4a] sm:$0xff]  ;;  %v3414_v18 = vpack.c.bf16 %v2322_v11, %v2321_v10  ;;  %v4335_v26 = vld [vmem:[%s4028_s24 + $0x52] sm:$0xff] }
  0x31   : > { %3247 = vmatprep.subr.bf16.mxu1 %v3246_v54  ;;  %v2192_v20 = vld [vmem:[%s4884_s1 + $0x138] sm:$0xff]  ;;  %v4339_v27 = vld [vmem:[%s4028_s24 + $0x48] sm:$0xff]  ;;  %v2193_v33 = vld [vmem:[%s4884_s1 + $0x140] sm:$0xff] }
  0x32   : > { %3373 = vmatpush3.bf16.msra.mxu0 %v3370_v49  ;;  %v2185_v49 = vld [vmem:[%s4884_s1 + $0x100] sm:$0xff]  ;;  %v2324_v25 = vld [vmem:[%s4884_s1 + $0x338] sm:$0xff]  ;;  %v3290_v28 = vpack.c.bf16 %v2192_v20, %v2191_v19  ;;  %v2194_v34 = vld [vmem:[%s4884_s1 + $0x148] sm:$0xff] }
  0x33   : > { %3375 = vmatprep.subr.bf16.mxu0 %v3374_v55  ;;  %2743 = vmatmul.mubr.f32.vlgmr.msra.gmra.mrb[0].mxu1 %v220_v58  ;;  %v2187_v58 = vld [vmem:[%s4884_s1 + $0x110] sm:$0xff]  ;;  %v2325_v36 = vld [vmem:[%s4884_s1 + $0x340] sm:$0xff]  ;;  %v3294_v42 = vpack.c.bf16 %v2194_v34, %v2193_v33  ;;  %v2328_v51 = vld [vmem:[%s4884_s1 + $0x358] sm:$0xff] }
  0x34   : > { %3249 = vmatpush3.bf16.msra.mxu1 %v3246_v54  ;;  %2745 = vmatprep.mubr.f32.mxu1 %v4044_v29  ;;  %v4191_v29 = vld [vmem:[%s4028_s24 + $0x81] sm:$0xff]  ;;  %v3282_v2 = vpack.c.bf16 %v2188_v59, %v2187_v58  ;;  %v4353_v35 = vld [vmem:[%s4028_s24 + $0x50] sm:$0xff]  ;;  %v4437_v19 = vld [vmem:[%s4028_s24 + $0x98] sm:$0xff] }
  0x35   : > { %2967 = vmatmul.mubr.f32.vlgmr.msra.gmra.mrb[0].mxu0 %v2236_v61  ;;  %3251 = vmatprep.subr.bf16.mxu1 %v3250_v62  ;;  %v187_v54 = vld [vmem:[%s4028_s24] sm:$0xff]  ;;  %v4427_v10 = vld [vmem:[%s4028_s24 + $0xaa] sm:$0xff] }
  0x36   : > { %3377 = vmatpush3.bf16.msra.mxu0 %v3374_v55  ;;  %2969 = vmatprep.mubr.f32.mxu0 %v4110_v63  ;;  %v3278_v55 = vpack.c.bf16 %v2186_v50, %v2185_v49  ;;  %v4367_v41 = vld [vmem:[%s4028_s24 + $0x60] sm:$0xff]  ;;  %v4381_v49 = vld [vmem:[%s4028_s24 + $0x68] sm:$0xff]  ;;  %v2327_v50 = vld [vmem:[%s4884_s1 + $0x350] sm:$0xff] }
  0x37   : > { %2746 = vmatmul.mubr.f32.gmra.mrb[2].mxu1 %v2236_v61  ;;  %3379 = vmatprep.subr.bf16.mxu0 %v3378_v0  ;;  %v2319_v61 = vld [vmem:[%s4884_s1 + $0x310] sm:$0xff]  ;;  %v4371_v43 = vld [vmem:[%s4028_s24 + $0x7a] sm:$0xff]  ;;  %v4391_v52 = vld [vmem:[%s4028_s24 + $0x82] sm:$0xff]  ;;  %v3426_v58 = vpack.c.bf16 %v2328_v51, %v2327_v50 }
  0x38   : > { %3253 = vmatpush3.bf16.msra.mxu1 %v3250_v62  ;;  %2748 = vmatprep.mubr.f32.mxu1 %v4110_v63  ;;  %v2320_v62 = vld [vmem:[%s4884_s1 + $0x318] sm:$0xff]  ;;  %v2197_v59 = vld [vmem:[%s4884_s1 + $0x160] sm:$0xff]  ;;  %v2331_v20 = vld [vmem:[%s4884_s1 + $0x370] sm:$0xff] }
  0x39   : > { %2970 = vmatmul.mubr.f32.gmra.mrb[2].mxu0 %v4126_v5  ;;  %3255 = vmatprep.subr.bf16.mxu1 %v3254_v6  ;;  %v3410_v4 = vpack.c.bf16 %v2320_v62, %v2319_v61  ;;  %v4409_v61 = vld [vmem:[%s4028_s24 + $0x80] sm:$0xff] }
  0x3a   : > { %3381 = vmatpush3.bf16.msra.mxu0 %v3378_v0  ;;  %2972 = vmatprep.mubr.f32.mxu0 %v4130_v7  ;;  %v4280_v0 = vld [vmem:[%s4028_s24 + $0x22] sm:$0xff] }
  0x3b   : > { %2749 = vmatmul.mubr.f32.gmra.mrb[4].mxu1 %v4126_v5  ;;  %3383 = vmatprep.subr.bf16.mxu0 %v3382_v8  ;;  %v2329_v62 = vld [vmem:[%s4884_s1 + $0x360] sm:$0xff] }
  0x3c   : > { %3257 = vmatpush3.bf16.msra.mxu1 %v3254_v6  ;;  %2751 = vmatprep.mubr.f32.mxu1 %v4130_v7  ;;  %v2189_v6 = vld [vmem:[%s4884_s1 + $0x120] sm:$0xff] }
  0x3d   : > { %2973 = vmatmul.mubr.f32.gmra.mrb[4].mxu0 %v4147_v13  ;;  %3259 = vmatprep.subr.bf16.mxu1 %v3258_v14  ;;  %v4455_v33 = vld [vmem:[%s4028_s24 + $0xc2] sm:$0xff] }
  0x3e   : > { %3385 = vmatpush3.bf16.msra.mxu0 %v3382_v8  ;;  %2975 = vmatprep.mubr.f32.mxu0 %v4152_v15  ;;  %v2190_v8 = vld [vmem:[%s4884_s1 + $0x128] sm:$0xff] }
  0x3f   : > { %2752 = vmatmul.mubr.f32.gmra.mrb[6].mxu1 %v4147_v13  ;;  %3387 = vmatprep.subr.bf16.mxu0 %v3386_v16  ;;  %v542_v50 = vld [vmem:[%s4028_s24 + $0x2] sm:$0xff] }
  0x40   : > { %3261 = vmatpush3.bf16.msra.mxu1 %v3258_v14  ;;  %2754 = vmatprep.mubr.f32.mxu1 %v4152_v15  ;;  %v4311_v14 = vld [vmem:[%s4028_s24 + $0x30] sm:$0xff] }
  0x41   : > { %2976 = vmatmul.mubr.f32.gmra.mrb[6].mxu0 %v4169_v21  ;;  %3263 = vmatprep.subr.bf16.mxu1 %v3262_v22 }
  0x42   : > { %3389 = vmatpush3.bf16.msra.mxu0 %v3386_v16  ;;  %2978 = vmatprep.mubr.f32.mxu0 %v4174_v23  ;;  %v3286_v16 = vpack.c.bf16 %v2190_v8, %v2189_v6  ;;  %v4423_v6 = vld [vmem:[%s4028_s24 + $0x90] sm:$0xff] }
  0x43   : > { %2755 = vmatmul.mubr.f32.gmra.mrb[8].mxu1 %v4169_v21  ;;  %3391 = vmatprep.subr.bf16.mxu0 %v3390_v24 }
  0x44   : > { %3265 = vmatpush3.bf16.msra.mxu1 %v3262_v22  ;;  %2757 = vmatprep.mubr.f32.mxu1 %v4174_v23  ;;  %v4325_v22 = vld [vmem:[%s4028_s24 + $0x38] sm:$0xff] }
  0x45   : > { %2979 = vmatmul.mubr.f32.gmra.mrb[8].mxu0 %v4191_v29  ;;  %3267 = vmatprep.subr.bf16.mxu1 %v3266_v30 }
  0x46   : > { %3393 = vmatpush3.bf16.msra.mxu0 %v3390_v24  ;;  %2981 = vmatprep.mubr.f32.mxu0 %v4196_v31  ;;  %v2323_v24 = vld [vmem:[%s4884_s1 + $0x330] sm:$0xff] }
  0x47   : > { %2758 = vmatmul.mubr.f32.gmra.mrb[10].mxu1 %v4191_v29  ;;  %3395 = vmatprep.subr.bf16.mxu0 %v3394_v32 }
  0x48   : > { %3269 = vmatpush3.bf16.msra.mxu1 %v3266_v30  ;;  %2760 = vmatprep.mubr.f32.mxu1 %v4196_v31  ;;  %v4343_v30 = vld [vmem:[%s4028_s24 + $0x62] sm:$0xff] }
  0x49   : > { %2982 = vmatmul.mubr.f32.gmra.mrb[10].mxu0 %v4213_v37  ;;  %3271 = vmatprep.subr.bf16.mxu1 %v3270_v38 }
  0x4a   : > { %3397 = vmatpush3.bf16.msra.mxu0 %v3394_v32  ;;  %2984 = vmatprep.mubr.f32.mxu0 %v4218_v39  ;;  %v3418_v32 = vpack.c.bf16 %v2324_v25, %v2323_v24  ;;  %v2332_v24 = vld [vmem:[%s4884_s1 + $0x378] sm:$0xff] }
  0x4b   : > { %2761 = vmatmul.mubr.f32.gmra.mrb[12].mxu1 %v4213_v37  ;;  %3399 = vmatprep.subr.bf16.mxu0 %v3398_v40  ;;  %v4447_v25 = vld [vmem:[%s4028_s24 + $0xb2] sm:$0xff]  ;;  %v3434_v34 = vpack.c.bf16 %v2332_v24, %v2331_v20  ;;  %v2353_v20 = vld [vmem:[%s4884_s1 + $0x3a0] sm:$0xff]  ;;  %v2354_v24 = vld [vmem:[%s4884_s1 + $0x3a8] sm:$0xff] }
  0x4c   : > { %3273 = vmatpush3.bf16.msra.mxu1 %v3270_v38  ;;  %2763 = vmatprep.mubr.f32.mxu1 %v4218_v39  ;;  %v2326_v38 = vld [vmem:[%s4884_s1 + $0x348] sm:$0xff] }
  0x4d   : > { %2985 = vmatmul.mubr.f32.gmra.mrb[12].mxu0 %v4235_v45  ;;  %3275 = vmatprep.subr.bf16.mxu1 %v3274_v46  ;;  %v3422_v44 = vpack.c.bf16 %v2326_v38, %v2325_v36  ;;  %v2219_v36 = vld [vmem:[%s4884_s1 + $0x180] sm:$0xff]  ;;  %v2220_v38 = vld [vmem:[%s4884_s1 + $0x188] sm:$0xff] }
  0x4e   : > { %3401 = vmatpush3.bf16.msra.mxu0 %v3398_v40  ;;  %2987 = vmatprep.mubr.f32.mxu0 %v4240_v47  ;;  %v4363_v40 = vld [vmem:[%s4028_s24 + $0x6a] sm:$0xff]  ;;  %v3310_v51 = vpack.c.bf16 %v2220_v38, %v2219_v36  ;;  %v2226_v38 = vld [vmem:[%s4884_s1 + $0x1b8] sm:$0xff] }
  0x4f   : > { %2764 = vmatmul.mubr.f32.gmra.mrb[14].mxu1 %v4235_v45  ;;  %3403 = vmatprep.subr.bf16.mxu0 %v3402_v48  ;;  %v2225_v36 = vld [vmem:[%s4884_s1 + $0x1b0] sm:$0xff] }
  0x50   : > { %3277 = vmatpush3.bf16.msra.mxu1 %v3274_v46  ;;  %2798 = vmatprep.mubr.f32.mxu1 %v187_v54  ;;  %v2195_v46 = vld [vmem:[%s4884_s1 + $0x150] sm:$0xff]  ;;  %v4395_v54 = vld [vmem:[%s4028_s24 + $0x78] sm:$0xff] }
  0x51   : > { %2988 = vmatmul.mubr.f32.gmra.mrb[14].mxu0 %v4257_v53  ;;  %3279 = vmatprep.subr.bf16.mxu1 %v3278_v55 }
  0x52   : > { %3405 = vmatpush3.bf16.msra.mxu0 %v3402_v48  ;;  %3022 = vmatprep.mubr.f32.mxu0 %v4263_v56  ;;  %v2196_v48 = vld [vmem:[%s4884_s1 + $0x158] sm:$0xff] }
  0x53   : > { %2799 = vmatmul.mubr.f32.vlgmr.msra.gmra.mrb[0].mxu1 %v188_v60  ;;  %3407 = vmatprep.subr.bf16.mxu0 %v3406_v57  ;;  %v2198_v60 = vld [vmem:[%s4884_s1 + $0x168] sm:$0xff] }
  0x54   : > { %3281 = vmatpush3.bf16.msra.mxu1 %v3278_v55  ;;  %2801 = vmatprep.mubr.f32.mxu1 %v4284_v1  ;;  %v3298_v55 = vpack.c.bf16 %v2196_v48, %v2195_v46  ;;  %v3302_v8 = vpack.c.bf16 %v2198_v60, %v2197_v59  ;;  %v2350_v46 = vld [vmem:[%s4884_s1 + $0x388] sm:$0xff]  ;;  %v2222_v59 = vld [vmem:[%s4884_s1 + $0x198] sm:$0xff] }
  0x55   : > { %3023 = vmatmul.mubr.f32.vlgmr.msra.gmra.mrb[0].mxu0 %v4280_v0  ;;  %3283 = vmatprep.subr.bf16.mxu1 %v3282_v2  ;;  %v4475_v48 = vld [vmem:[%s4028_s24 + $0xca] sm:$0xff] }
  0x56   : > { %3409 = vmatpush3.bf16.msra.mxu0 %v3406_v57  ;;  %3025 = vmatprep.mubr.f32.mxu0 %v4287_v3  ;;  %v4399_v57 = vld [vmem:[%s4028_s24 + $0x92] sm:$0xff]  ;;  %v543_v60 = vld [vmem:[%s4028_s24 + $0xa] sm:$0xff] }
  0x57   : > { %2802 = vmatmul.mubr.f32.gmra.mrb[2].mxu1 %v4297_v9  ;;  %3411 = vmatprep.subr.bf16.mxu0 %v3410_v4 }
  0x58   : > { %3285 = vmatpush3.bf16.msra.mxu1 %v3282_v2  ;;  %2804 = vmatprep.mubr.f32.mxu1 %v4311_v14  ;;  %v2330_v2 = vld [vmem:[%s4884_s1 + $0x368] sm:$0xff] }
  0x59   : > { %3026 = vmatmul.mubr.f32.gmra.mrb[2].mxu0 %v4307_v12  ;;  %3287 = vmatprep.subr.bf16.mxu1 %v3286_v16  ;;  %v3430_v11 = vpack.c.bf16 %v2330_v2, %v2329_v62  ;;  %v2351_v62 = vld [vmem:[%s4884_s1 + $0x390] sm:$0xff]  ;;  %v2352_v2 = vld [vmem:[%s4884_s1 + $0x398] sm:$0xff] }
  0x5a   : > { %3413 = vmatpush3.bf16.msra.mxu0 %v3410_v4  ;;  %3028 = vmatprep.mubr.f32.mxu0 %v4315_v17  ;;  %v4419_v4 = vld [vmem:[%s4028_s24 + $0x9a] sm:$0xff] }
  0x5b   : > { %2805 = vmatmul.mubr.f32.gmra.mrb[4].mxu1 %v4325_v22  ;;  %3415 = vmatprep.subr.bf16.mxu0 %v3414_v18 }
  0x5c   : > { %3289 = vmatpush3.bf16.msra.mxu1 %v3286_v16  ;;  %2807 = vmatprep.mubr.f32.mxu1 %v4339_v27  ;;  %v2199_v16 = vld [vmem:[%s4884_s1 + $0x170] sm:$0xff] }
  0x5d   : > { %3029 = vmatmul.mubr.f32.gmra.mrb[4].mxu0 %v4335_v26  ;;  %3291 = vmatprep.subr.bf16.mxu1 %v3290_v28 }
  0x5e   : > { %3417 = vmatpush3.bf16.msra.mxu0 %v3414_v18  ;;  %3031 = vmatprep.mubr.f32.mxu0 %v4343_v30  ;;  %v2200_v18 = vld [vmem:[%s4884_s1 + $0x178] sm:$0xff] }
  0x5f   : > { %2808 = vmatmul.mubr.f32.gmra.mrb[6].mxu1 %v4353_v35  ;;  %3419 = vmatprep.subr.bf16.mxu0 %v3418_v32 }
  0x60   : > { %3293 = vmatpush3.bf16.msra.mxu1 %v3290_v28  ;;  %2810 = vmatprep.mubr.f32.mxu1 %v4367_v41  ;;  %v4451_v28 = vld [vmem:[%s4028_s24 + $0xa8] sm:$0xff] }
  0x61   : > { %3032 = vmatmul.mubr.f32.gmra.mrb[6].mxu0 %v4363_v40  ;;  %3295 = vmatprep.subr.bf16.mxu1 %v3294_v42 }
  0x62   : > { %3421 = vmatpush3.bf16.msra.mxu0 %v3418_v32  ;;  %3034 = vmatprep.mubr.f32.mxu0 %v4371_v43  ;;  %v3306_v32 = vpack.c.bf16 %v2200_v18, %v2199_v16  ;;  %v2223_v16 = vld [vmem:[%s4884_s1 + $0x1a0] sm:$0xff]  ;;  %v2224_v18 = vld [vmem:[%s4884_s1 + $0x1a8] sm:$0xff] }
  0x63   : > { %2811 = vmatmul.mubr.f32.gmra.mrb[8].mxu1 %v4381_v49  ;;  %3423 = vmatprep.subr.bf16.mxu0 %v3422_v44 }
  0x64   : > { %3297 = vmatpush3.bf16.msra.mxu1 %v3294_v42  ;;  %2813 = vmatprep.mubr.f32.mxu1 %v4395_v54  ;;  %v4465_v42 = vld [vmem:[%s4028_s24 + $0xb0] sm:$0xff] }
  0x65   : > { %3035 = vmatmul.mubr.f32.gmra.mrb[8].mxu0 %v4391_v52  ;;  %3299 = vmatprep.subr.bf16.mxu1 %v3298_v55 }
  0x66   : > { %3425 = vmatpush3.bf16.msra.mxu0 %v3422_v44  ;;  %3037 = vmatprep.mubr.f32.mxu0 %v4399_v57  ;;  %v2349_v44 = vld [vmem:[%s4884_s1 + $0x380] sm:$0xff] }
  0x67   : > { %2814 = vmatmul.mubr.f32.gmra.mrb[10].mxu1 %v4409_v61  ;;  %3427 = vmatprep.subr.bf16.mxu0 %v3426_v58 }
  0x68   : > { %3301 = vmatpush3.bf16.msra.mxu1 %v3298_v55  ;;  %2816 = vmatprep.mubr.f32.mxu1 %v4423_v6  ;;  %v3438_v55 = vpack.c.bf16 %v2350_v46, %v2349_v44  ;;  %v3322_v44 = vpack.c.bf16 %v2226_v38, %v2225_v36  ;;  %v4576_v38 = vld [vmem:[%s4028_s24 + $0xc0] sm:$0xff] }
  0x69   : > { %3038 = vmatmul.mubr.f32.gmra.mrb[10].mxu0 %v4419_v4  ;;  %3303 = vmatprep.subr.bf16.mxu1 %v3302_v8 }
  0x6a   : > { %3429 = vmatpush3.bf16.msra.mxu0 %v3426_v58  ;;  %3040 = vmatprep.mubr.f32.mxu0 %v4427_v10  ;;  %v2221_v58 = vld [vmem:[%s4884_s1 + $0x190] sm:$0xff] }
  0x6b   : > { %2817 = vmatmul.mubr.f32.gmra.mrb[12].mxu1 %v4437_v19  ;;  %3431 = vmatprep.subr.bf16.mxu0 %v3430_v11 }
  0x6c   : > { %3305 = vmatpush3.bf16.msra.mxu1 %v3302_v8  ;;  %2819 = vmatprep.mubr.f32.mxu1 %v4451_v28  ;;  %v3314_v8 = vpack.c.bf16 %v2222_v59, %v2221_v58  ;;  %v2358_v58 = vld [vmem:[%s4884_s1 + $0x3c8] sm:$0xff] }
  0x6d   : > { %3041 = vmatmul.mubr.f32.gmra.mrb[12].mxu0 %v4447_v25  ;;  %3307 = vmatprep.subr.bf16.mxu1 %v3306_v32 }
  0x6e   : > { %3433 = vmatpush3.bf16.msra.mxu0 %v3430_v11  ;;  %3043 = vmatprep.mubr.f32.mxu0 %v4455_v33  ;;  %v3442_v11 = vpack.c.bf16 %v2352_v2, %v2351_v62  ;;  %v2229_v62 = vld [vmem:[%s4884_s1 + $0x1d0] sm:$0xff]  ;;  %v2230_v2 = vld [vmem:[%s4884_s1 + $0x1d8] sm:$0xff] }
  0x6f   : > { %2820 = vmatmul.mubr.f32.gmra.mrb[14].mxu1 %v4465_v42  ;;  %3435 = vmatprep.subr.bf16.mxu0 %v3434_v34 }
  0x70   : > { %3309 = vmatpush3.bf16.msra.mxu1 %v3306_v32  ;;  %2854 = vmatprep.mubr.f32.mxu1 %v542_v50  ;;  %v3318_v32 = vpack.c.bf16 %v2224_v18, %v2223_v16  ;;  %v2227_v50 = vld [vmem:[%s4884_s1 + $0x1c0] sm:$0xff]  ;;  %v3330_v16 = vpack.c.bf16 %v2230_v2, %v2229_v62  ;;  %v2382_v62 = vld [vmem:[%s4884_s1 + $0x408] sm:$0xff] }
  0x71   : > { %3044 = vmatmul.mubr.f32.gmra.mrb[14].mxu0 %v4475_v48  ;;  %3311 = vmatprep.subr.bf16.mxu1 %v3310_v51  ;;  %v2316_v2 = vld [vmem:[%s4028_s24 + $0xe0] sm:$0xff] }
  0x72   : > { %3437 = vmatpush3.bf16.msra.mxu0 %v3434_v34  ;;  %3078 = vmatprep.mubr.f32.mxu0 %v4311_v14  ;;  %v3446_v34 = vpack.c.bf16 %v2354_v24, %v2353_v20  ;;  %v2231_v20 = vld [vmem:[%s4884_s1 + $0x1e0] sm:$0xff]  ;;  %v2232_v24 = vld [vmem:[%s4884_s1 + $0x1e8] sm:$0xff] }
  0x73   : > { %2855 = vmatmul.mubr.f32.vlgmr.msra.gmra.mrb[0].mxu1 %v543_v60  ;;  %3439 = vmatprep.subr.bf16.mxu0 %v3438_v55  ;;  %v3334_v36 = vpack.c.bf16 %v2232_v24, %v2231_v20  ;;  %v2385_v20 = vld [vmem:[%s4884_s1 + $0x420] sm:$0xff]  ;;  %v2386_v24 = vld [vmem:[%s4884_s1 + $0x428] sm:$0xff] }
  0x74   : > { %3313 = vmatpush3.bf16.msra.mxu1 %v3310_v51  ;;  %2857 = vmatprep.mubr.f32.mxu1 %v4263_v56  ;;  %v2355_v56 = vld [vmem:[%s4884_s1 + $0x3b0] sm:$0xff]  ;;  %v2228_v51 = vld [vmem:[%s4884_s1 + $0x1c8] sm:$0xff] }
  0x75   : > { %3079 = vmatmul.mubr.f32.vlgmr.msra.gmra.mrb[0].mxu0 %v4325_v22  ;;  %3315 = vmatprep.subr.bf16.mxu1 %v3314_v8  ;;  %v3326_v59 = vpack.c.bf16 %v2228_v51, %v2227_v50  ;;  %v2364_v50 = vld [vmem:[%s4884_s1 + $0x3f8] sm:$0xff]  ;;  %v4593_v51 = vld [vmem:[%s4028_s24 + $0xc8] sm:$0xff] }
  0x76   : > { %3441 = vmatpush3.bf16.msra.mxu0 %v3438_v55  ;;  %3081 = vmatprep.mubr.f32.mxu0 %v4339_v27  ;;  %v2357_v55 = vld [vmem:[%s4884_s1 + $0x3c0] sm:$0xff] }
  0x77   : > { %2858 = vmatmul.mubr.f32.gmra.mrb[2].mxu1 %v4280_v0  ;;  %3443 = vmatprep.subr.bf16.mxu0 %v3442_v11  ;;  %v2356_v0 = vld [vmem:[%s4884_s1 + $0x3b8] sm:$0xff]  ;;  %v3454_v60 = vpack.c.bf16 %v2358_v58, %v2357_v55 }
  0x78   : > { %3317 = vmatpush3.bf16.msra.mxu1 %v3314_v8  ;;  %2860 = vmatprep.mubr.f32.mxu1 %v4287_v3  ;;  %v3450_v46 = vpack.c.bf16 %v2356_v0, %v2355_v56  ;;  %v2359_v8 = vld [vmem:[%s4884_s1 + $0x3d0] sm:$0xff]  ;;  %v2315_v58 = vld [vmem:[%s4028_s24 + $0xd8] sm:$0xff] }
  0x79   : > { %3082 = vmatmul.mubr.f32.gmra.mrb[2].mxu0 %v4353_v35  ;;  %3319 = vmatprep.subr.bf16.mxu1 %v3318_v32  ;;  %v2233_v0 = vld [vmem:[%s4884_s1 + $0x1f0] sm:$0xff] }
  0x7a   : > { %3445 = vmatpush3.bf16.msra.mxu0 %v3442_v11  ;;  %3084 = vmatprep.mubr.f32.mxu0 %v4367_v41  ;;  %v2360_v11 = vld [vmem:[%s4884_s1 + $0x3d8] sm:$0xff] }
  0x7b   : > { %2861 = vmatmul.mubr.f32.gmra.mrb[4].mxu1 %v4307_v12  ;;  %3447 = vmatprep.subr.bf16.mxu0 %v3446_v34  ;;  %v3458_v18 = vpack.c.bf16 %v2360_v11, %v2359_v8  ;;  %v2383_v11 = vld [vmem:[%s4884_s1 + $0x410] sm:$0xff] }
  0x7c   : > { %3321 = vmatpush3.bf16.msra.mxu1 %v3318_v32  ;;  %2863 = vmatprep.mubr.f32.mxu1 %v4315_v17  ;;  %v2361_v32 = vld [vmem:[%s4884_s1 + $0x3e0] sm:$0xff] }
  0x7d   : > { %3085 = vmatmul.mubr.f32.gmra.mrb[4].mxu0 %v4381_v49  ;;  %3323 = vmatprep.subr.bf16.mxu1 %v3322_v44 }
  0x7e   : > { %3449 = vmatpush3.bf16.msra.mxu0 %v3446_v34  ;;  %3087 = vmatprep.mubr.f32.mxu0 %v4395_v54  ;;  %v2362_v34 = vld [vmem:[%s4884_s1 + $0x3e8] sm:$0xff] }
  0x7f   : > { %2864 = vmatmul.mubr.f32.gmra.mrb[6].mxu1 %v4335_v26  ;;  %3451 = vmatprep.subr.bf16.mxu0 %v3450_v46  ;;  %v3462_v56 = vpack.c.bf16 %v2362_v34, %v2361_v32 }
  0x80   : > { %3325 = vmatpush3.bf16.msra.mxu1 %v3322_v44  ;;  %2866 = vmatprep.mubr.f32.mxu1 %v4343_v30  ;;  %v2234_v44 = vld [vmem:[%s4884_s1 + $0x1f8] sm:$0xff] }
  0x81   : > { %3088 = vmatmul.mubr.f32.gmra.mrb[6].mxu0 %v4409_v61  ;;  %3327 = vmatprep.subr.bf16.mxu1 %v3326_v59  ;;  %v3338_v55 = vpack.c.bf16 %v2234_v44, %v2233_v0 }
  0x82   : > { %3453 = vmatpush3.bf16.msra.mxu0 %v3450_v46  ;;  %3090 = vmatprep.mubr.f32.mxu0 %v4423_v6  ;;  %v2363_v46 = vld [vmem:[%s4884_s1 + $0x3f0] sm:$0xff] }
  0x83   : > { %2867 = vmatmul.mubr.f32.gmra.mrb[8].mxu1 %v4363_v40  ;;  %3455 = vmatprep.subr.bf16.mxu0 %v3454_v60 }
  0x84   : > { %3329 = vmatpush3.bf16.msra.mxu1 %v3326_v59  ;;  %2869 = vmatprep.mubr.f32.mxu1 %v4371_v43  ;;  %v3466_v59 = vpack.c.bf16 %v2364_v50, %v2363_v46 }
  0x85   : > { %3091 = vmatmul.mubr.f32.gmra.mrb[8].mxu0 %v4437_v19  ;;  %3331 = vmatprep.subr.bf16.mxu1 %v3330_v16 }
  0x86   : > { %3457 = vmatpush3.bf16.msra.mxu0 %v3454_v60  ;;  %3093 = vmatprep.mubr.f32.mxu0 %v4451_v28  ;;  %v2381_v60 = vld [vmem:[%s4884_s1 + $0x400] sm:$0xff] }
  0x87   : > { %2870 = vmatmul.mubr.f32.gmra.mrb[10].mxu1 %v4391_v52  ;;  %3459 = vmatprep.subr.bf16.mxu0 %v3458_v18  ;;  %v3470_v8 = vpack.c.bf16 %v2382_v62, %v2381_v60 }
  0x88   : > { %3333 = vmatpush3.bf16.msra.mxu1 %v3330_v16  ;;  %2872 = vmatprep.mubr.f32.mxu1 %v4399_v57  ;;  %v2384_v16 = vld [vmem:[%s4884_s1 + $0x418] sm:$0xff] }
  0x89   : > { %3094 = vmatmul.mubr.f32.gmra.mrb[10].mxu0 %v4465_v42  ;;  %3335 = vmatprep.subr.bf16.mxu1 %v3334_v36 }
  0x8a   : > { %3461 = vmatpush3.bf16.msra.mxu0 %v3458_v18  ;;  %3096 = vmatprep.mubr.f32.mxu0 %v4576_v38  ;;  %v3474_v18 = vpack.c.bf16 %v2384_v16, %v2383_v11 }
  0x8b   : > { %2873 = vmatmul.mubr.f32.gmra.mrb[12].mxu1 %v4419_v4  ;;  %3463 = vmatprep.subr.bf16.mxu0 %v3462_v56 }
  0x8c   : > { %3337 = vmatpush3.bf16.msra.mxu1 %v3334_v36  ;;  %2875 = vmatprep.mubr.f32.mxu1 %v4427_v10 }
  0x8d   : > { %3097 = vmatmul.mubr.f32.gmra.mrb[12].mxu0 %v4593_v51  ;;  %3339 = vmatprep.subr.bf16.mxu1 %v3338_v55 }
  0x8e   : > { %3465 = vmatpush3.bf16.msra.mxu0 %v3462_v56  ;;  %3099 = vmatprep.mubr.f32.mxu0 %v2315_v58 }
  0x8f   : > { %2876 = vmatmul.mubr.f32.gmra.mrb[14].mxu1 %v4447_v25  ;;  %3467 = vmatprep.subr.bf16.mxu0 %v3466_v59 }
  0x90   : > { %3341 = vmatpush3.bf16.msra.mxu1 %v3338_v55  ;;  %2910 = vmatprep.mubr.f32.mxu1 %v4284_v1  ;;  %v2387_v1 = vld [vmem:[%s4884_s1 + $0x430] sm:$0xff]  ;;  %v4711_v55 = vld [vmem:[%s4885_s2] ss:$0 sm:$0xff] }
  0x91   : > { %3100 = vmatmul.mubr.f32.gmra.mrb[14].mxu0 %v2316_v2  ;;  %3502 = vmatprep.subr.bf16.mxu1 %v3470_v8 }
  0x92   : > { %3469 = vmatpush3.bf16.msra.mxu0 %v3466_v59  ;;  %3134 = vmatprep.mubr.f32.mxu0 %v4110_v63  ;;  %v3478_v63 = vpack.c.bf16 %v2386_v24, %v2385_v20 }
  0x93   : > { %3471 = vmatprep.subr.bf16.mxu0 %v3470_v8  ;;  %2911 = vmatmul.mubr.f32.vlgmr.msra.gmra.mrb[0].mxu1 %v4297_v9  ;;  %v2388_v9 = vld [vmem:[%s4884_s1 + $0x438] sm:$0xff] }
  0x94   : > { %3510 = vmatpush3.bf16.msra.mxu1 %v3470_v8  ;;  %2913 = vmatprep.mubr.f32.mxu1 %v4311_v14  ;;  %v2390_v14 = vld [vmem:[%s4884_s1 + $0x448] sm:$0xff] }
  0x95   : > { %3135 = vmatmul.mubr.f32.vlgmr.msra.gmra.mrb[0].mxu0 %v4126_v5  ;;  %3503 = vmatprep.subr.bf16.mxu1 %v3474_v18  ;;  %v3482_v5 = vpack.c.bf16 %v2388_v9, %v2387_v1 }
  0x96   : > { %3473 = vmatpush3.bf16.msra.mxu0 %v3470_v8  ;;  %3137 = vmatprep.mubr.f32.mxu0 %v4130_v7  ;;  %v2389_v7 = vld [vmem:[%s4884_s1 + $0x440] sm:$0xff] }
  0x97   : > { %3475 = vmatprep.subr.bf16.mxu0 %v3474_v18  ;;  %2914 = vmatmul.mubr.f32.gmra.mrb[2].mxu1 %v4325_v22  ;;  %v2392_v22 = vld [vmem:[%s4884_s1 + $0x458] sm:$0xff] }
  0x98   : > { %3511 = vmatpush3.bf16.msra.mxu1 %v3474_v18  ;;  %2916 = vmatprep.mubr.f32.mxu1 %v4339_v27  ;;  %v2394_v27 = vld [vmem:[%s4884_s1 + $0x468] sm:$0xff] }
  0x99   : > { %3138 = vmatmul.mubr.f32.gmra.mrb[2].mxu0 %v4147_v13  ;;  %3504 = vmatprep.subr.bf16.mxu1 %v3478_v63  ;;  %v3486_v13 = vpack.c.bf16 %v2390_v14, %v2389_v7 }
  0x9a   : > { %3477 = vmatpush3.bf16.msra.mxu0 %v3474_v18  ;;  %3140 = vmatprep.mubr.f32.mxu0 %v4152_v15  ;;  %v2391_v15 = vld [vmem:[%s4884_s1 + $0x450] sm:$0xff] }
  0x9b   : > { %3479 = vmatprep.subr.bf16.mxu0 %v3478_v63  ;;  %2917 = vmatmul.mubr.f32.gmra.mrb[4].mxu1 %v4353_v35  ;;  %v2347_v35 = vld [vmem:[%s4028_s24 + $0xd9] sm:$0xff] }
  0x9c   : > { %3512 = vmatpush3.bf16.msra.mxu1 %v3478_v63  ;;  %2919 = vmatprep.mubr.f32.mxu1 %v4367_v41  ;;  %v2348_v41 = vld [vmem:[%s4028_s24 + $0xe1] sm:$0xff] }
  0x9d   : > { %3141 = vmatmul.mubr.f32.gmra.mrb[4].mxu0 %v4169_v21  ;;  %3505 = vmatprep.subr.bf16.mxu1 %v3482_v5  ;;  %v3490_v21 = vpack.c.bf16 %v2392_v22, %v2391_v15 }
  0x9e   : > { %3481 = vmatpush3.bf16.msra.mxu0 %v3478_v63  ;;  %3143 = vmatprep.mubr.f32.mxu0 %v4174_v23  ;;  %v2393_v23 = vld [vmem:[%s4884_s1 + $0x460] sm:$0xff] }
  0x9f   : > { %3483 = vmatprep.subr.bf16.mxu0 %v3482_v5  ;;  %2920 = vmatmul.mubr.f32.gmra.mrb[6].mxu1 %v4381_v49 }
  0xa0   : > { %3513 = vmatpush3.bf16.msra.mxu1 %v3482_v5  ;;  %2922 = vmatprep.mubr.f32.mxu1 %v4395_v54 }
  0xa1   : > { %3144 = vmatmul.mubr.f32.gmra.mrb[6].mxu0 %v4191_v29  ;;  %3506 = vmatprep.subr.bf16.mxu1 %v3486_v13  ;;  %v3494_v29 = vpack.c.bf16 %v2394_v27, %v2393_v23 }
  0xa2   : > { %3485 = vmatpush3.bf16.msra.mxu0 %v3482_v5  ;;  %3146 = vmatprep.mubr.f32.mxu0 %v4196_v31  ;;  %v2395_v31 = vld [vmem:[%s4884_s1 + $0x470] sm:$0xff] }
  0xa3   : > { %3487 = vmatprep.subr.bf16.mxu0 %v3486_v13  ;;  %2923 = vmatmul.mubr.f32.gmra.mrb[8].mxu1 %v4409_v61 }
  0xa4   : > { %3514 = vmatpush3.bf16.msra.mxu1 %v3486_v13  ;;  %2925 = vmatprep.mubr.f32.mxu1 %v4423_v6 }
  0xa5   : > { %3147 = vmatmul.mubr.f32.gmra.mrb[8].mxu0 %v4213_v37  ;;  %3507 = vmatprep.subr.bf16.mxu1 %v3490_v21  ;;  %v2396_v37 = vld [vmem:[%s4884_s1 + $0x478] sm:$0xff] }
  0xa6   : > { %3489 = vmatpush3.bf16.msra.mxu0 %v3486_v13  ;;  %3149 = vmatprep.mubr.f32.mxu0 %v4218_v39  ;;  %v3498_v39 = vpack.c.bf16 %v2396_v37, %v2395_v31 }
  0xa7   : > { %3491 = vmatprep.subr.bf16.mxu0 %v3490_v21  ;;  %2926 = vmatmul.mubr.f32.gmra.mrb[10].mxu1 %v4437_v19 }
  0xa8   : > { %3515 = vmatpush3.bf16.msra.mxu1 %v3490_v21  ;;  %2928 = vmatprep.mubr.f32.mxu1 %v4451_v28 }
  0xa9   : > { %3150 = vmatmul.mubr.f32.gmra.mrb[10].mxu0 %v4235_v45  ;;  %3508 = vmatprep.subr.bf16.mxu1 %v3494_v29  ;;  %v2379_v45 = vld [vmem:[%s4028_s24 + $0xda] sm:$0xff] }
  0xaa   : > { %3493 = vmatpush3.bf16.msra.mxu0 %v3490_v21  ;;  %3152 = vmatprep.mubr.f32.mxu0 %v4240_v47  ;;  %v2380_v47 = vld [vmem:[%s4028_s24 + $0xe2] sm:$0xff]  ;;  %s3788_s24 = sshll.u32 %s3880_s10, 4  ;;  %s3789_s24 = int_to_ptr.vmem [resolvable:$false] %s3788_s24 }
  0xab   : > { %3495 = vmatprep.subr.bf16.mxu0 %v3494_v29  ;;  %2929 = vmatmul.mubr.f32.gmra.mrb[12].mxu1 %v4465_v42  ;;  %s3790_s11 = scalar_lea.vmem %s3789_s24, 4096  ;;  %p3791_p2 = scmp.lt.s32.totalorder %s4824_s6, %s3789_s24 }
  0xac   : > { %3516 = vmatpush3.bf16.msra.mxu1 %v3494_v29  ;;  %2931 = vmatprep.mubr.f32.mxu1 %v4576_v38  ;;  %p3792_p4 = scmp.lt.s32.totalorder %s3790_s11, %s3784_s16 }
  0xad   : > { %3153 = vmatmul.mubr.f32.gmra.mrb[12].mxu0 %v4257_v53  ;;  %3509 = vmatprep.subr.bf16.mxu1 %v3498_v39 }
  0xae   : > { %3497 = vmatpush3.bf16.msra.mxu0 %v3494_v29  ;;  %3155 = vmatprep.mubr.f32.mxu0 %v2347_v35  ;;  %p3793_p5 = por %p3792_p4, %p3791_p2 }
  0xaf   : > { %3499 = vmatprep.subr.bf16.mxu0 %v3498_v39  ;;  %2932 = vmatmul.mubr.f32.gmra.mrb[14].mxu1 %v4593_v51 }
  0xb0   : > { %3517 = vmatpush3.bf16.msra.mxu1 %v3498_v39  ;;  %3202 = vmatprep.mubr.f32.mxu1 %v4399_v57  ;;  %p3794_p6 = pnand %p3793_p5, %p3787_p1 }
  0xb1   : > { %3156 = vmatmul.mubr.f32.gmra.mrb[14].mxu0 %v2348_v41 }
  0xb2   : > { %3501 = vmatpush3.bf16.msra.mxu0 %v3498_v39  ;;  %3190 = vmatprep.mubr.f32.mxu0 %v4287_v3 }
  0xb3   : > { %3203 = vmatmul.mubr.f32.vlgmr.msra.gmra.mrb[16].mxu1 %v4419_v4 }
  0xb4   : > { %3205 = vmatprep.mubr.f32.mxu1 %v4427_v10 }
  0xb5   : > { %3191 = vmatmul.mubr.f32.vlgmr.msra.gmra.mrb[0].mxu0 %v4307_v12 }
  0xb6   : > { %3193 = vmatprep.mubr.f32.mxu0 %v4315_v17 }
  0xb7   : > { %3206 = vmatmul.mubr.f32.gmra.mrb[18].mxu1 %v4447_v25 }
  0xb8   : > { %3208 = vmatprep.mubr.f32.mxu1 %v4455_v33 }
  0xb9   : > { %3194 = vmatmul.mubr.f32.gmra.mrb[2].mxu0 %v4335_v26 }
  0xba   : > { %3196 = vmatprep.mubr.f32.mxu0 %v4343_v30 }
  0xbb   : > { %3209 = vmatmul.mubr.f32.gmra.mrb[20].mxu1 %v4475_v48 }
  0xbc   : > { %3211 = vmatprep.mubr.f32.mxu1 %v2379_v45 }
  0xbd   : > { %3197 = vmatmul.mubr.f32.gmra.mrb[4].mxu0 %v4363_v40 }
  0xbe   : > { %3199 = vmatprep.mubr.f32.mxu0 %v4371_v43 }
  0xbf   : > { %3212 = vmatmul.mubr.f32.gmra.mrb[22].mxu1 %v2380_v47 }
  0xc1   : > { %3200 = vmatmul.mubr.f32.gmra.mrb[6].mxu0 %v4391_v52 }
 0x166   : > { %v2912_v53 = vpop.f32.mrb[0].mxu1 }
 0x167   : > { %v838_v3 = vpop.f32.mrb[1].mxu1 }
 0x16a   : > { %v2915_v12 = vpop.f32.mrb[2].mxu1 }
 0x16b   : > { %v848_v17 = vpop.f32.mrb[3].mxu1 }
 0x16e   : > { %v4698_v26 = vpop.f32.mrb[4].mxu1 }
 0x16f   : > { %v4700_v49 = vpop.f32.mrb[5].mxu1 }
 0x172   : > { %v4702_v30 = vpop.f32.mrb[6].mxu1 }
 0x173   : > { %v4704_v54 = vpop.f32.mrb[7].mxu1 }
 0x176   : > { %v2924_v40 = vpop.f32.mrb[8].mxu1 }
 0x177   : > { %v878_v61 = vpop.f32.mrb[9].mxu1 }
 0x178   : > { %v3148_v57 = vpop.f32.mrb[8].mxu0 }
 0x179   : > { %v3526_v4 = vadd.f32 %v3148_v57, %v2924_v40  ;;  %v1657_v43 = vpop.f32.mrb[9].mxu0 }
 0x17a   : > { %v3528_v6 = vadd.f32 %v1657_v43, %v878_v61  ;;  %v2927_v10 = vpop.f32.mrb[10].mxu1 }
 0x17b   : > { %v888_v19 = vpop.f32.mrb[11].mxu1 }
 0x17c   : > { %v3151_v52 = vpop.f32.mrb[10].mxu0 }
 0x17d   : > { %v3530_v25 = vadd.f32 %v3151_v52, %v2927_v10  ;;  %v1667_v28 = vpop.f32.mrb[11].mxu0 }
 0x17e   : > { %v3532_v33 = vadd.f32 %v1667_v28, %v888_v19  ;;  %v2930_v42 = vpop.f32.mrb[12].mxu1 }
 0x17f   : > { %v898_v32 = vpop.f32.mrb[13].mxu1 }
 0x180   : > { %v3154_v48 = vpop.f32.mrb[12].mxu0 }
 0x181   : > { %v3534_v34 = vadd.f32 %v3154_v48, %v2930_v42  ;;  %v1677_v36 = vpop.f32.mrb[13].mxu0 }
 0x182   : > { %v3536_v38 = vadd.f32 %v1677_v36, %v898_v32  ;;  %v2933_v56 = vpop.f32.mrb[14].mxu1 }
 0x183   : > { %v908_v44 = vpop.f32.mrb[15].mxu1 }
 0x184   : > { %v3157_v0 = vpop.f32.mrb[14].mxu0 }
 0x185   : > { %v3538_v46 = vadd.f32 %v3157_v0, %v2933_v56  ;;  %v1687_v50 = vpop.f32.mrb[15].mxu0 }
 0x186   : > { %v4706_v51 = vadd.f32 %v1687_v50, %v908_v44  ;;  %v3204_v58 = vpop.f32.mrb[16].mxu1 }
 0x187   : > { %v3527_v60 = vadd.f32 %v3526_v4, %v3204_v58  ;;  %v1851_v62 = vpop.f32.mrb[17].mxu1 }
 0x188   : > { %v3192_v59 = vpop.f32.mrb[0].mxu0  ;;  %v3529_v11 = vadd.f32 %v3528_v6, %v1851_v62 }
 0x189   : > { %v3518_v2 = vadd.f32 %v3192_v59, %v2912_v53  ;;  %v1811_v8 = vpop.f32.mrb[1].mxu0  ;;  %v4714_v16 = vadd.f32 %v3527_v60, %v4711_v55 }
 0x18a   : > { %v3519_v18 = vadd.f32 %v1811_v8, %v838_v3  ;;  %v4720_v24 = vadd.f32 %v3529_v11, %v4711_v55  ;;  %v3207_v63 = vpop.f32.mrb[18].mxu1 }
 0x18b   : > { %v4717_v20 = vadd.f32 %v3518_v2, %v4711_v55  ;;  %v2407_v1 = vmul.f32 -1.442695, %v4714_v16  ;;  %v3531_v7 = vadd.f32 %v3530_v25, %v3207_v63  ;;  %v1861_v14 = vpop.f32.mrb[19].mxu1 }
 0x18c   : > { %v4724_v9 = vadd.f32 %v3519_v18, %v4711_v55  ;;  %v3195_v5 = vpop.f32.mrb[2].mxu0  ;;  %v2406_v15 = vmul.f32 -1.442695, %v4720_v24  ;;  %v3533_v23 = vadd.f32 %v3532_v33, %v1861_v14 }
 0x18d   : > { %v2399_v13 = vmul.f32 -1.442695, %v4717_v20  ;;  %v3520_v22 = vadd.f32 %v3195_v5, %v2915_v12  ;;  %v1821_v21 = vpop.f32.mrb[3].mxu0  ;;  %3720 = vpow2.f32 %v2407_v1  ;;  %v4730_v29 = vadd.f32 %v3531_v7, %v4711_v55 }
 0x18e   : > { %v2398_v27 = vmul.f32 -1.442695, %v4724_v9  ;;  %v3521_v31 = vadd.f32 %v1821_v21, %v848_v17  ;;  %v4736_v39 = vadd.f32 %v3533_v23, %v4711_v55  ;;  %v3210_v35 = vpop.f32.mrb[20].mxu1 }
 0x18f   : > { %3722 = vpow2.f32 %v2399_v13  ;;  %v4733_v37 = vadd.f32 %v3520_v22, %v4711_v55  ;;  %v2409_v41 = vmul.f32 -1.442695, %v4730_v29  ;;  %v3535_v53 = vadd.f32 %v3534_v34, %v3210_v35  ;;  %v1871_v3 = vpop.f32.mrb[21].mxu1 }
 0x190   : > { %3724 = vpow2.f32 %v2398_v27  ;;  %v4740_v45 = vadd.f32 %v3521_v31, %v4711_v55  ;;  %v3198_v47 = vpop.f32.mrb[4].mxu0  ;;  %v2408_v17 = vmul.f32 -1.442695, %v4736_v39  ;;  %v3537_v10 = vadd.f32 %v3536_v38, %v1871_v3 }
 0x191   : > { %3726 = vpow2.f32 %v2406_v15  ;;  %v2401_v12 = vmul.f32 -1.442695, %v4733_v37  ;;  %v3522_v40 = vadd.f32 %v3198_v47, %v4698_v26  ;;  %v1831_v57 = vpop.f32.mrb[5].mxu0  ;;  %v4747_v4 = vadd.f32 %v3535_v53, %v4711_v55 }
 0x192   : > { %3728 = vpow2.f32 %v2409_v41  ;;  %v2400_v61 = vmul.f32 -1.442695, %v4740_v45  ;;  %v3523_v43 = vadd.f32 %v1831_v57, %v4700_v49  ;;  %v3213_v52 = vpop.f32.mrb[22].mxu1  ;;  %v4759_v49 = vadd.f32 %v3537_v10, %v4711_v55 }
 0x193   : > { %3730 = vpow2.f32 %v2401_v12  ;;  %v4751_v6 = vadd.f32 %v3522_v40, %v4711_v55  ;;  %v2411_v19 = vmul.f32 -1.442695, %v4747_v4  ;;  %v3539_v28 = vadd.f32 %v3538_v46, %v3213_v52  ;;  %v1881_v33 = vpop.f32.mrb[23].mxu1 }
 0x194   : > { %3732 = vpow2.f32 %v2400_v61  ;;  %v4755_v26 = vadd.f32 %v3523_v43, %v4711_v55  ;;  %v3201_v25 = vpop.f32.mrb[6].mxu0  ;;  %v2410_v56 = vmul.f32 -1.442695, %v4759_v49  ;;  %v3541_v0 = vadd.f32 %v4706_v51, %v1881_v33 }
 0x195   : > { %3734 = vpow2.f32 %v2408_v17  ;;  %v2403_v42 = vmul.f32 -1.442695, %v4751_v6  ;;  %v3524_v48 = vadd.f32 %v3201_v25, %v4702_v30  ;;  %v1841_v32 = vpop.f32.mrb[7].mxu0  ;;  %v4764_v36 = vadd.f32 %v3539_v28, %v4711_v55 }
 0x196   : > { %3736 = vpow2.f32 %v2411_v19  ;;  %v2402_v34 = vmul.f32 -1.442695, %v4755_v26  ;;  %v3525_v38 = vadd.f32 %v1841_v32, %v4704_v54  ;;  %v4780_v27 = vadd.f32 %v3541_v0, %v4711_v55 }
 0x197   : > { %3738 = vpow2.f32 %v2403_v42  ;;  %v3721_v44 = vpop.eup %3720  ;;  %v2413_v46 = vmul.f32 -1.442695, %v4764_v36  ;;  %v4772_v5 = vadd.f32 %v3524_v48, %v4711_v55 }
 0x198   : > { %3740 = vpow2.f32 %v2402_v34  ;;  %v1986_v30 = vadd.f32 1.0, %v3721_v44  ;;  %v4775_v22 = vadd.f32 %v3525_v38, %v4711_v55  ;;  %v2412_v55 = vmul.f32 -1.442695, %v4780_v27 }
 0x199   : > { %v3723_v50 = vpop.eup %3722  ;;  %3742 = vpow2.f32 %v2410_v56  ;;  %v2405_v41 = vmul.f32 -1.442695, %v4772_v5 }
 0x19a   : > { %v3725_v58 = vpop.eup %3724  ;;  %v1978_v59 = vadd.f32 1.0, %v3723_v50  ;;  %3744 = vpow2.f32 %v2413_v46  ;;  %v2404_v17 = vmul.f32 -1.442695, %v4775_v22 }
 0x19b   : > { %v3727_v60 = vpop.eup %3726  ;;  %3746 = vrcp.f32 %v1986_v30  ;;  %v1977_v62 = vadd.f32 1.0, %v3725_v58 }
 0x19c   : > { %v3729_v54 = vpop.eup %3728  ;;  %3748 = vrcp.f32 %v1978_v59  ;;  %v1985_v2 = vadd.f32 1.0, %v3727_v60 }
 0x19d   : > { %v3731_v8 = vpop.eup %3730  ;;  %3750 = vrcp.f32 %v1977_v62  ;;  %v1988_v51 = vadd.f32 1.0, %v3729_v54 }
 0x19e   : > { %v3733_v11 = vpop.eup %3732  ;;  %3752 = vrcp.f32 %v1985_v2  ;;  %v1980_v18 = vadd.f32 1.0, %v3731_v8 }
 0x19f   : > { %v3735_v63 = vpop.eup %3734  ;;  %3754 = vrcp.f32 %v1988_v51  ;;  %v1979_v1 = vadd.f32 1.0, %v3733_v11 }
 0x1a0   : > { %v3737_v7 = vpop.eup %3736  ;;  %3756 = vrcp.f32 %v1980_v18  ;;  %v1987_v14 = vadd.f32 1.0, %v3735_v63 }
 0x1a1   : > { %v3739_v13 = vpop.eup %3738  ;;  %3758 = vrcp.f32 %v1979_v1  ;;  %v1990_v15 = vadd.f32 1.0, %v3737_v7 }
 0x1a2   : > { %v3741_v21 = vpop.eup %3740  ;;  %3760 = vrcp.f32 %v1987_v14  ;;  %v1982_v23 = vadd.f32 1.0, %v3739_v13 }
 0x1a3   : > { %v3743_v31 = vpop.eup %3742  ;;  %3762 = vrcp.f32 %v1990_v15  ;;  %v1981_v35 = vadd.f32 1.0, %v3741_v21 }
 0x1a4   : > { %v3745_v47 = vpop.eup %3744  ;;  %3764 = vrcp.f32 %v1982_v23  ;;  %v1989_v53 = vadd.f32 1.0, %v3743_v31 }
 0x1a5   : > { %v3747_v3 = vpop.eup %3746  ;;  %3766 = vrcp.f32 %v1981_v35  ;;  %v1992_v12 = vadd.f32 1.0, %v3745_v47 }
 0x1a6   : > { %v3749_v40 = vpop.eup %3748  ;;  %v2034_v57 = vmul.f32 %v3747_v3, %v4714_v16  ;;  %3768 = vrcp.f32 %v1989_v53 }
 0x1a7   : > { %v3751_v61 = vpop.eup %3750  ;;  %v2026_v43 = vmul.f32 %v3749_v40, %v4717_v20  ;;  %3770 = vpow2.f32 %v2405_v41 }
 0x1a8   : > { %v3753_v10 = vpop.eup %3752  ;;  %2050 = vst [vmem:[%s4787_s21 + $0x48] sm:$0xff] %v2034_v57  ;;  %v2025_v52 = vmul.f32 %v3751_v61, %v4724_v9  ;;  %3772 = vrcp.f32 %v1992_v12 }
 0x1a9   : > { %v3755_v16 = vpop.eup %3754  ;;  %2042 = vst [vmem:[%s4787_s21 + $0x8] sm:$0xff] %v2026_v43  ;;  %v2033_v19 = vmul.f32 %v3753_v10, %v4720_v24  ;;  %3774 = vpow2.f32 %v2404_v17 }
 0x1aa   : > { %v3757_v20 = vpop.eup %3756  ;;  %2041 = vst [vmem:[%s4787_s21] sm:$0xff] %v2025_v52  ;;  %v2036_v25 = vmul.f32 %v3755_v16, %v4730_v29  ;;  %3776 = vpow2.f32 %v2412_v55 }
 0x1ab   : > { %v3759_v28 = vpop.eup %3758  ;;  %2049 = vst [vmem:[%s4787_s21 + $0x40] sm:$0xff] %v2033_v19  ;;  %v2028_v33 = vmul.f32 %v3757_v20, %v4733_v37 }
 0x1ac   : > { %v3761_v9 = vpop.eup %3760  ;;  %2052 = vst [vmem:[%s4787_s21 + $0x58] sm:$0xff] %v2036_v25  ;;  %v2027_v42 = vmul.f32 %v3759_v28, %v4740_v45 }
 0x1ad   : > { %v3763_v48 = vpop.eup %3762  ;;  %2044 = vst [vmem:[%s4787_s21 + $0x18] sm:$0xff] %v2028_v33  ;;  %v2035_v24 = vmul.f32 %v3761_v9, %v4736_v39 }
 0x1ae   : > { %v3765_v32 = vpop.eup %3764  ;;  %2043 = vst [vmem:[%s4787_s21 + $0x10] sm:$0xff] %v2027_v42  ;;  %v2038_v29 = vmul.f32 %v3763_v48, %v4747_v4 }
 0x1af   : > { %v3767_v34 = vpop.eup %3766  ;;  %2051 = vst [vmem:[%s4787_s21 + $0x50] sm:$0xff] %v2035_v24  ;;  %v2030_v38 = vmul.f32 %v3765_v32, %v4751_v6 }
 0x1b0   : > { %v3769_v37 = vpop.eup %3768  ;;  %2054 = vst [vmem:[%s4787_s21 + $0x68] sm:$0xff] %v2038_v29  ;;  %v2029_v56 = vmul.f32 %v3767_v34, %v4755_v26 }
 0x1b1   : > { %v3771_v45 = vpop.eup %3770  ;;  %2046 = vst [vmem:[%s4787_s21 + $0x28] sm:$0xff] %v2030_v38  ;;  %v2037_v39 = vmul.f32 %v3769_v37, %v4759_v49 }
 0x1b2   : > { %v3773_v0 = vpop.eup %3772  ;;  %2045 = vst [vmem:[%s4787_s21 + $0x20] sm:$0xff] %v2029_v56  ;;  %v1984_v44 = vadd.f32 1.0, %v3771_v45 }
 0x1b3   : > { %v3775_v4 = vpop.eup %3774  ;;  %2053 = vst [vmem:[%s4787_s21 + $0x60] sm:$0xff] %v2037_v39  ;;  %v2040_v46 = vmul.f32 %v3773_v0, %v4764_v36 }
 0x1b4   : > { %v3777_v6 = vpop.eup %3776  ;;  %3778 = vrcp.f32 %v1984_v44  ;;  %v1983_v50 = vadd.f32 1.0, %v3775_v4 }
 0x1b5   : > { %2056 = vst [vmem:[%s4787_s21 + $0x78] sm:$0xff] %v2040_v46  ;;  %v1991_v26 = vadd.f32 1.0, %v3777_v6 }
 0x1b6   : > { %3780 = vrcp.f32 %v1983_v50 }
 0x1b7   : > { %3782 = vrcp.f32 %v1991_v26 }
 0x1be   : > { %v3779_v49 = vpop.eup %3778 }
 0x1bf   : > { %v2032_v36 = vmul.f32 %v3779_v49, %v4772_v5 }
 0x1c0   : > { %v3781_v30 = vpop.eup %3780 }
 0x1c1   : > { %v3783_v58 = vpop.eup %3782  ;;  %2048 = vst [vmem:[%s4787_s21 + $0x38] sm:$0xff] %v2032_v36  ;;  %v2031_v59 = vmul.f32 %v3781_v30, %v4775_v22 }
 0x1c2   : > { %v2039_v60 = vmul.f32 %v3783_v58, %v4780_v27 }
 0x1c3   : > { %2047 = vst [vmem:[%s4787_s21 + $0x30] sm:$0xff] %v2031_v59 }
 0x1c4   : > { %2055 = vst [vmem:[%s4787_s21 + $0x70] sm:$0xff] %v2039_v60 }
 0x1c5   : > { %3797 = shalt.err (!%p3794_p6)
}
 0x1c6   : > { %s3798_s20 = scalar_lea.hbm %s4822_s9, 2048  ;;  %s3802_s29 = scalar_lea.hbm %s4886_s3, 8192 }
 0x1c7   : > { %p3799_p7 = scmp.ne.s32.totalorder %s4822_s9, %s3798_s20  ;;  %p3803_p11 = scmp.lt.u32.totalorder %s4822_s9, %s4886_s3 }
 0x1c8   : > { %p3804_p12 = scmp.lt.u32.totalorder %s3802_s29, %s3798_s20  ;;  %p3806_p0 = scmp.lt.u32.totalorder %s3798_s20, %s4822_s9 }
 0x1c9   : > { %p3800_p9 = pnand %p3799_p7, %p3954_p3 }
 0x1ca   : > { %p3805_p13 = por %p3804_p12, %p3803_p11 }
 0x1cb   : > { %p3801_p10 = pneg %p3800_p9 }
 0x1cc   : > { %p3807_p1 = por %p3806_p0, %p3805_p13 }
 0x1ce   : > { %p3808_p2 = pnand %p3807_p1, %p3801_p10 }
 0x1d0   : > { %3811 = shalt.err (!%p3808_p2)
}
 0x1d1   : > { %s3881_s5 = smov 128   ;;  %s3882_s27 = smov 8  }
 0x1d2   : > { %3647 = dma.vmem_to_hbm [thread:$0]  (%p3954_p3), %s4824_s6, 2048, %s4822_s9, %s4831_s15, %s3881_s5, %s3881_s5, %s3882_s27  }
 0x1d3 PF: > { %p3653_p4 = scmp.ge.s32.totalorder %s3878_s19, 2  ;;  %s2089_s7 = sand.u32 1, %s3850_s12  }
 0x1d4   : > { %s2090_s16 = scalar_lea.sflag [#allocation3], %s2089_s7 }
 0x1d5   : > { %p3650_p5 = pnand %p3653_p4, %p3963_p8 }
 0x1d7   : > { %3845 = dma.done.wait (!%p3650_p5), %s2090_s16, 2048  }
 0x1d8   : > { %3847 = vsyncadd (!%p3650_p5), %s2090_s16, 4294965248  ;;  %s16_s19 = sadd.s32 1, %s3878_s19   ;;  %s4889_s12 = smov %s3854_s13 }
 0x1d9   : > { %p13_p6 = scmp.ge.s32.totalorder %s16_s19, 6   ;;  %s4890_s13 = smov %s3858_s14 }
 0x1da   : > { %s4891_s14 = smov %s3972_s30  ;;  %s4892_s15 = smov %s3870_s17 }
 0x1db   : > { %s4893_s16 = smov %s3874_s18  ;;  %s4894_s17 = smov %s4897_s22 }
 0x1dc   : > { %s4895_s18 = smov %s4901_s23  ;;  %15 = sbr.rel (!%p13_p6) target bundleno = 5 (0x5), region = 78 }
 0x1e3   :  { %2095 = vsyncpa [#allocation3], 1 }
 0x1e4   :  { %2097 = vsyncpa [#allocation3 + $0x1], 1 }

</bundles_post_ra>
